<compile_context>
chip_gen: v7x
topology: tpu7x:2x2x1
jax: 0.10.0
libtpu: 0.0.40
codegen_flags: <defaults>
</compile_context>

<pallas_src>
import jax
import jax.numpy as jnp
from jax.experimental import pallas as pl
from jax.experimental.pallas import tpu as pltpu

HIDDEN1_UNITS = 400
HIDDEN2_UNITS = 400
HIDDEN3_UNITS = 400

HIDDEN_PAD = 512     # hidden width zero-padded to a multiple of 128 (bit-exact)
TILE_B_MAX = 512     # max batch rows per grid step (weights stay VMEM-resident)


def _softplus(z):
    # numerically stable softplus, same semantics as nn.functional.softplus
    return jnp.maximum(z, 0.0) + jnp.log1p(jnp.exp(-jnp.abs(z)))


def _round_up(v, m):
    return ((v + m - 1) // m) * m


def _pad_to(arr, axis, size):
    pad = size - arr.shape[axis]
    if pad <= 0:
        return arr
    widths = [(0, 0)] * arr.ndim
    widths[axis] = (0, pad)
    return jnp.pad(arr, widths)


def penn_kernel(x_ref,
                w1_ref, w2_ref, w3_ref, w4_ref,
                bh_ref, b4_ref, bounds_ref,
                out_ref):
    """One grid step == (one ensemble member, one batch tile)."""
    x = x_ref[...]                                                    # (Bt, Din) bf16

    h1 = jnp.maximum(
        jnp.dot(x, w1_ref[0], preferred_element_type=jnp.float32) + bh_ref[0, 0], 0.0)
    h2 = jnp.maximum(
        jnp.dot(h1.astype(jnp.bfloat16), w2_ref[0],
                preferred_element_type=jnp.float32) + bh_ref[0, 1], 0.0)
    h3 = jnp.maximum(
        jnp.dot(h2.astype(jnp.bfloat16), w3_ref[0],
                preferred_element_type=jnp.float32) + bh_ref[0, 2], 0.0)

    # single merged head: (Bt, 2*S) f32, then cheap lane slices
    out = jnp.dot(h3.astype(jnp.bfloat16), w4_ref[0],
                  preferred_element_type=jnp.float32) + b4_ref[0]

    s = bounds_ref.shape[1]
    mean = out[:, :s]
    raw_v = out[:, s:]

    max_lv = bounds_ref[0:1, :]                                       # (1, S) f32
    min_lv = bounds_ref[1:2, :]                                       # (1, S) f32
    logvar = max_lv - _softplus(max_lv - raw_v)
    logvar = min_lv + _softplus(logvar - min_lv)

    # one lane-contiguous store per step: mean ‖ logvar on the last axis
    out_ref[0] = jnp.concatenate([mean, logvar], axis=-1).astype(out_ref.dtype)


def prepare_params(params, max_logvar, min_logvar):
    """One-time weight preprocessing (call at init / after each optimizer step).

    Pads the 400-wide hidden layers to 512 (bit-exact through ReLU), casts the
    matmul weights to bf16 for MXU streaming, stacks the three hidden biases,
    and concatenates the logvar bounds.
    """
    H = HIDDEN_PAD
    state_dim = max_logvar.shape[-1]

    w1 = _pad_to(params["w1"], 2, H).astype(jnp.bfloat16)                 # (N, Din, H)
    w2 = _pad_to(_pad_to(params["w2"], 1, H), 2, H).astype(jnp.bfloat16)  # (N, H, H)
    w3 = _pad_to(_pad_to(params["w3"], 1, H), 2, H).astype(jnp.bfloat16)  # (N, H, H)
    w4 = _pad_to(params["w4"], 1, H).astype(jnp.bfloat16)                 # (N, H, 2S)

    bh = jnp.stack([_pad_to(params["b1"], 2, H),
                    _pad_to(params["b2"], 2, H),
                    _pad_to(params["b3"], 2, H)], axis=1)                 # (N, 3, 1, H) f32
    b4 = params["b4"]                                                     # (N, 1, 2S) f32
    bounds = jnp.concatenate([max_logvar, min_logvar], axis=0)            # (2, S) f32

    return {
        "w1": w1, "w2": w2, "w3": w3, "w4": w4,
        "bh": bh, "b4": b4, "bounds": bounds,
        "num_nets": params["w1"].shape[0],
        "state_dim": state_dim,
        "din": params["w1"].shape[1],
    }


def penn_forward(x, prepared):
    """Returns (means, logvars), each of shape (num_nets, batch, state_dim)."""
    num_nets = prepared["num_nets"]
    state_dim = prepared["state_dim"]
    din = prepared["din"]
    batch = x.shape[0]

    # --- batch tiling (inner grid axis); weights stay resident across it.
    if batch >= 128:
        tile_b = min(TILE_B_MAX, _round_up(batch, 128))
    else:
        tile_b = _round_up(batch, 16)          # bf16 sublane packing minimum
    b_pad = _round_up(batch, tile_b)
    n_bt = b_pad // tile_b

    # pre-cast activations to bf16 in the wrapper (kernel streams half the bytes)
    x_p = _pad_to(x, 0, b_pad).astype(jnp.bfloat16)

    def net_spec(arr):
        # select ensemble member n along the leading axis, full block elsewhere,
        # independent of the batch-tile index b (stays VMEM-resident per net).
        block = (1,) + arr.shape[1:]
        zeros = (0,) * (arr.ndim - 1)
        return pl.BlockSpec(block, lambda n, b: (n,) + zeros)

    in_specs = [
        pl.BlockSpec((tile_b, din), lambda n, b: (b, 0)),             # x batch tile
        net_spec(prepared["w1"]),
        net_spec(prepared["w2"]),
        net_spec(prepared["w3"]),
        net_spec(prepared["w4"]),
        net_spec(prepared["bh"]),
        net_spec(prepared["b4"]),
        pl.BlockSpec((2, state_dim), lambda n, b: (0, 0)),            # logvar bounds
    ]
    out_specs = pl.BlockSpec((1, tile_b, 2 * state_dim), lambda n, b: (n, b, 0))
    out_shape = jax.ShapeDtypeStruct((num_nets, b_pad, 2 * state_dim), jnp.float32)

    # net axis is independent -> parallel; batch axis has no cross-step carry, so
    # it may be parallel too (used when num_nets is odd/1 so megacore can shard it).
    if num_nets % 2 == 0:
        dims = ("parallel", "arbitrary")
    else:
        dims = ("parallel", "parallel")

    out = pl.pallas_call(
        penn_kernel,
        out_shape=out_shape,
        grid_spec=pltpu.PrefetchScalarGridSpec(
            num_scalar_prefetch=0,
            grid=(num_nets, n_bt),
            in_specs=in_specs,
            out_specs=out_specs,
        ),
        compiler_params=pltpu.CompilerParams(
            dimension_semantics=dims,
            # explicit budget: double-buffered weights (~2.2 MiB) + activations
            # at tile_b<=512 stay far below this on every generation (v5e's
            # scoped default is only 16 MiB, so raise it explicitly).
            vmem_limit_bytes=32 * 1024 * 1024,
        ),
    )(x_p,
      prepared["w1"], prepared["w2"], prepared["w3"], prepared["w4"],
      prepared["bh"], prepared["b4"], prepared["bounds"])

    means = out[:, :batch, :state_dim]
    logvars = out[:, :batch, state_dim:]
    return means, logvars


def penn_forward_ref(x, params, max_logvar, min_logvar):
    """Pure-JAX f32 reference matching the PyTorch module."""
    state_dim = max_logvar.shape[-1]
    means, logvars = [], []
    for n in range(params["w1"].shape[0]):
        h = x
        for i in (1, 2, 3):
            h = jnp.maximum(h @ params[f"w{i}"][n] + params[f"b{i}"][n][0], 0.0)
        out = h @ params["w4"][n] + params["b4"][n][0]
        mean = out[:, :state_dim]
        raw_v = out[:, state_dim:]
        lv = max_logvar - jax.nn.softplus(max_logvar - raw_v)
        lv = min_logvar + jax.nn.softplus(lv - min_logvar)
        means.append(mean)
        logvars.append(lv)
    return jnp.stack(means, 0), jnp.stack(logvars, 0)


def init_params(key, num_nets, state_dim, action_dim):
    """Deterministic init mimicking nn.Linear default (uniform +-1/sqrt(fan_in))."""
    din = state_dim + action_dim
    sizes = [din, HIDDEN1_UNITS, HIDDEN2_UNITS, HIDDEN3_UNITS, 2 * state_dim]
    params = {}
    for i in range(4):
        fan_in = sizes[i]
        bound = 1.0 / float(fan_in) ** 0.5
        key, kw, kb = jax.random.split(key, 3)
        params[f"w{i + 1}"] = jax.random.uniform(
            kw, (num_nets, sizes[i], sizes[i + 1]), jnp.float32, -bound, bound)
        # biases stored as (num_nets, 1, out) so the per-net block has full last-2 dims
        params[f"b{i + 1}"] = jax.random.uniform(
            kb, (num_nets, 1, sizes[i + 1]), jnp.float32, -bound, bound)
    return params


if __name__ == "__main__":
    # TODO(synk): train_model / Adam / GaussianNLLLoss are host-side training code,
    # not part of the forward kernel.
    num_nets = 2
    state_dim = 8
    action_dim = 4
    batch = 8

    key = jax.random.PRNGKey(0)
    key, kx, kp = jax.random.split(key, 3)

    x = jax.random.normal(kx, (batch, state_dim + action_dim), jnp.float32)
    params = init_params(kp, num_nets, state_dim, action_dim)
    max_logvar = jnp.full((1, state_dim), -3.0, jnp.float32)   # registered buffer
    min_logvar = jnp.full((1, state_dim), -7.0, jnp.float32)   # registered buffer

    # one-time weight preprocessing (would be redone only after optimizer steps)
    prepared = prepare_params(params, max_logvar, min_logvar)
    jax.block_until_ready(prepared)

    means, logvars = penn_forward(x, prepared)
    jax.block_until_ready((means, logvars))

    ref_means, ref_logvars = penn_forward_ref(x, params, max_logvar, min_logvar)
    assert means.shape == (num_nets, batch, state_dim)
    assert logvars.shape == (num_nets, batch, state_dim)
    # tolerance loosened vs the f32 reference: weights/activations stream as bf16
    # into the MXU (accumulation stays f32).
    assert jnp.allclose(means, ref_means, atol=5e-2, rtol=5e-2)
    assert jnp.allclose(logvars, ref_logvars, atol=5e-2, rtol=5e-2)

    print("KERNEL_OK")
</pallas_src>

<mosaic_0001>
module attributes {stable_mosaic.version = 11 : i64} {
  func.func @penn_kernel(%arg0: i32, %arg1: i32, %arg2: memref<16x12xbf16, #tpu.memory_space<vmem>>, %arg3: memref<1x12x512xbf16, #tpu.memory_space<vmem>>, %arg4: memref<1x512x512xbf16, #tpu.memory_space<vmem>>, %arg5: memref<1x512x512xbf16, #tpu.memory_space<vmem>>, %arg6: memref<1x512x16xbf16, #tpu.memory_space<vmem>>, %arg7: memref<1x3x1x512xf32, #tpu.memory_space<vmem>>, %arg8: memref<1x1x16xf32, #tpu.memory_space<vmem>>, %arg9: memref<2x8xf32, #tpu.memory_space<vmem>>, %arg10: memref<1x16x16xf32, #tpu.memory_space<vmem>>) attributes {dimension_semantics = [#tpu.dimension_semantics<parallel>, #tpu.dimension_semantics<arbitrary>], iteration_bounds = array<i64: 2, 1>, scalar_prefetch = 0 : i64, scratch_operands = 0 : i64, tpu.core_type = #tpu.core_type<tc>, window_params = [{transform_indices = @transform_0, window_bounds = array<i64: 16, 12>}, {transform_indices = @transform_1, window_bounds = array<i64: 1, 12, 512>}, {transform_indices = @transform_2, window_bounds = array<i64: 1, 512, 512>}, {transform_indices = @transform_3, window_bounds = array<i64: 1, 512, 512>}, {transform_indices = @transform_4, window_bounds = array<i64: 1, 512, 16>}, {transform_indices = @transform_5, window_bounds = array<i64: 1, 3, 1, 512>}, {transform_indices = @transform_6, window_bounds = array<i64: 1, 1, 16>}, {pipeline_mode = #tpu.pipeline_mode<synchronous>, transform_indices = @transform_7, window_bounds = array<i64: 2, 8>}, {transform_indices = @transform_8, window_bounds = array<i64: 1, 16, 16>}]} {
    %c0 = arith.constant 0 : index
    %c0_0 = arith.constant 0 : index
    %0 = vector.load %arg2[%c0, %c0_0] : memref<16x12xbf16, #tpu.memory_space<vmem>>, vector<16x12xbf16>
    %c0_1 = arith.constant 0 : index
    %c0_2 = arith.constant 0 : index
    %c0_3 = arith.constant 0 : index
    %1 = vector.load %arg3[%c0_1, %c0_2, %c0_3] : memref<1x12x512xbf16, #tpu.memory_space<vmem>>, vector<1x12x512xbf16>
    %2 = vector.shape_cast %1 : vector<1x12x512xbf16> to vector<12x512xbf16>
    %cst = arith.constant dense<0.000000e+00> : vector<16x512xf32>
    %3 = tpu.matmul %0, %2, %cst {dimension_numbers = #tpu.dot_dimension_numbers<[1], [0], [0], [1], [0, 0, 1, 1], [], []>} : vector<16x12xbf16>, vector<12x512xbf16>, vector<16x512xf32> -> vector<16x512xf32>
    %c0_4 = arith.constant 0 : index
    %c0_5 = arith.constant 0 : index
    %c0_6 = arith.constant 0 : index
    %c0_7 = arith.constant 0 : index
    %4 = vector.load %arg7[%c0_4, %c0_5, %c0_6, %c0_7] : memref<1x3x1x512xf32, #tpu.memory_space<vmem>>, vector<1x1x1x512xf32>
    %5 = vector.shape_cast %4 : vector<1x1x1x512xf32> to vector<1x512xf32>
    %6 = vector.broadcast %5 : vector<1x512xf32> to vector<16x512xf32>
    %7 = arith.addf %3, %6 : vector<16x512xf32>
    %cst_8 = arith.constant 0.000000e+00 : f32
    %8 = vector.broadcast %cst_8 : f32 to vector<16x512xf32>
    %9 = arith.maximumf %7, %8 : vector<16x512xf32>
    %10 = arith.truncf %9 : vector<16x512xf32> to vector<16x512xbf16>
    %c0_9 = arith.constant 0 : index
    %c0_10 = arith.constant 0 : index
    %c0_11 = arith.constant 0 : index
    %11 = vector.load %arg4[%c0_9, %c0_10, %c0_11] : memref<1x512x512xbf16, #tpu.memory_space<vmem>>, vector<1x512x512xbf16>
    %12 = vector.shape_cast %11 : vector<1x512x512xbf16> to vector<512x512xbf16>
    %cst_12 = arith.constant dense<0.000000e+00> : vector<16x512xf32>
    %13 = tpu.matmul %10, %12, %cst_12 {dimension_numbers = #tpu.dot_dimension_numbers<[1], [0], [0], [1], [0, 0, 1, 1], [], []>} : vector<16x512xbf16>, vector<512x512xbf16>, vector<16x512xf32> -> vector<16x512xf32>
    %c0_13 = arith.constant 0 : index
    %c1 = arith.constant 1 : index
    %c0_14 = arith.constant 0 : index
    %c0_15 = arith.constant 0 : index
    %14 = vector.load %arg7[%c0_13, %c1, %c0_14, %c0_15] : memref<1x3x1x512xf32, #tpu.memory_space<vmem>>, vector<1x1x1x512xf32>
    %15 = vector.shape_cast %14 : vector<1x1x1x512xf32> to vector<1x512xf32>
    %16 = vector.broadcast %15 : vector<1x512xf32> to vector<16x512xf32>
    %17 = arith.addf %13, %16 : vector<16x512xf32>
    %cst_16 = arith.constant 0.000000e+00 : f32
    %18 = vector.broadcast %cst_16 : f32 to vector<16x512xf32>
    %19 = arith.maximumf %17, %18 : vector<16x512xf32>
    %20 = arith.truncf %19 : vector<16x512xf32> to vector<16x512xbf16>
    %c0_17 = arith.constant 0 : index
    %c0_18 = arith.constant 0 : index
    %c0_19 = arith.constant 0 : index
    %21 = vector.load %arg5[%c0_17, %c0_18, %c0_19] : memref<1x512x512xbf16, #tpu.memory_space<vmem>>, vector<1x512x512xbf16>
    %22 = vector.shape_cast %21 : vector<1x512x512xbf16> to vector<512x512xbf16>
    %cst_20 = arith.constant dense<0.000000e+00> : vector<16x512xf32>
    %23 = tpu.matmul %20, %22, %cst_20 {dimension_numbers = #tpu.dot_dimension_numbers<[1], [0], [0], [1], [0, 0, 1, 1], [], []>} : vector<16x512xbf16>, vector<512x512xbf16>, vector<16x512xf32> -> vector<16x512xf32>
    %c0_21 = arith.constant 0 : index
    %c2 = arith.constant 2 : index
    %c0_22 = arith.constant 0 : index
    %c0_23 = arith.constant 0 : index
    %24 = vector.load %arg7[%c0_21, %c2, %c0_22, %c0_23] : memref<1x3x1x512xf32, #tpu.memory_space<vmem>>, vector<1x1x1x512xf32>
    %25 = vector.shape_cast %24 : vector<1x1x1x512xf32> to vector<1x512xf32>
    %26 = vector.broadcast %25 : vector<1x512xf32> to vector<16x512xf32>
    %27 = arith.addf %23, %26 : vector<16x512xf32>
    %cst_24 = arith.constant 0.000000e+00 : f32
    %28 = vector.broadcast %cst_24 : f32 to vector<16x512xf32>
    %29 = arith.maximumf %27, %28 : vector<16x512xf32>
    %30 = arith.truncf %29 : vector<16x512xf32> to vector<16x512xbf16>
    %c0_25 = arith.constant 0 : index
    %c0_26 = arith.constant 0 : index
    %c0_27 = arith.constant 0 : index
    %31 = vector.load %arg6[%c0_25, %c0_26, %c0_27] : memref<1x512x16xbf16, #tpu.memory_space<vmem>>, vector<1x512x16xbf16>
    %32 = vector.shape_cast %31 : vector<1x512x16xbf16> to vector<512x16xbf16>
    %cst_28 = arith.constant dense<0.000000e+00> : vector<16x16xf32>
    %33 = tpu.matmul %30, %32, %cst_28 {dimension_numbers = #tpu.dot_dimension_numbers<[1], [0], [0], [1], [0, 0, 1, 1], [], []>} : vector<16x512xbf16>, vector<512x16xbf16>, vector<16x16xf32> -> vector<16x16xf32>
    %c0_29 = arith.constant 0 : index
    %c0_30 = arith.constant 0 : index
    %c0_31 = arith.constant 0 : index
    %34 = vector.load %arg8[%c0_29, %c0_30, %c0_31] : memref<1x1x16xf32, #tpu.memory_space<vmem>>, vector<1x1x16xf32>
    %35 = vector.shape_cast %34 : vector<1x1x16xf32> to vector<1x16xf32>
    %36 = vector.broadcast %35 : vector<1x16xf32> to vector<16x16xf32>
    %37 = arith.addf %33, %36 : vector<16x16xf32>
    %38 = vector.extract_strided_slice %37 {offsets = [0, 0], sizes = [16, 8], strides = [1, 1]} : vector<16x16xf32> to vector<16x8xf32>
    %39 = vector.extract_strided_slice %37 {offsets = [0, 8], sizes = [16, 8], strides = [1, 1]} : vector<16x16xf32> to vector<16x8xf32>
    %c0_32 = arith.constant 0 : index
    %c0_33 = arith.constant 0 : index
    %40 = vector.load %arg9[%c0_32, %c0_33] : memref<2x8xf32, #tpu.memory_space<vmem>>, vector<1x8xf32>
    %c1_34 = arith.constant 1 : index
    %c0_35 = arith.constant 0 : index
    %41 = vector.load %arg9[%c1_34, %c0_35] : memref<2x8xf32, #tpu.memory_space<vmem>>, vector<1x8xf32>
    %42 = vector.broadcast %40 : vector<1x8xf32> to vector<16x8xf32>
    %43 = arith.subf %42, %39 : vector<16x8xf32>
    %cst_36 = arith.constant 0.000000e+00 : f32
    %44 = vector.broadcast %cst_36 : f32 to vector<16x8xf32>
    %45 = arith.maximumf %43, %44 : vector<16x8xf32>
    %46 = math.absf %43 : vector<16x8xf32>
    %cst_37 = arith.constant 0.000000e+00 : f32
    %47 = vector.broadcast %cst_37 : f32 to vector<16x8xf32>
    %48 = arith.subf %47, %46 : vector<16x8xf32>
    %49 = math.exp %48 : vector<16x8xf32>
    %50 = math.log1p %49 : vector<16x8xf32>
    %51 = arith.addf %45, %50 : vector<16x8xf32>
    %52 = vector.broadcast %40 : vector<1x8xf32> to vector<16x8xf32>
    %53 = arith.subf %52, %51 : vector<16x8xf32>
    %54 = vector.broadcast %41 : vector<1x8xf32> to vector<16x8xf32>
    %55 = arith.subf %53, %54 : vector<16x8xf32>
    %cst_38 = arith.constant 0.000000e+00 : f32
    %56 = vector.broadcast %cst_38 : f32 to vector<16x8xf32>
    %57 = arith.maximumf %55, %56 : vector<16x8xf32>
    %58 = math.absf %55 : vector<16x8xf32>
    %cst_39 = arith.constant 0.000000e+00 : f32
    %59 = vector.broadcast %cst_39 : f32 to vector<16x8xf32>
    %60 = arith.subf %59, %58 : vector<16x8xf32>
    %61 = math.exp %60 : vector<16x8xf32>
    %62 = math.log1p %61 : vector<16x8xf32>
    %63 = arith.addf %57, %62 : vector<16x8xf32>
    %64 = vector.broadcast %41 : vector<1x8xf32> to vector<16x8xf32>
    %65 = arith.addf %64, %63 : vector<16x8xf32>
    %66 = tpu.concatenate %38, %65 in 1 : vector<16x8xf32>, vector<16x8xf32> -> vector<16x16xf32>
    %c0_40 = arith.constant 0 : index
    %c0_41 = arith.constant 0 : index
    %c0_42 = arith.constant 0 : index
    %67 = vector.load %arg10[%c0_40, %c0_41, %c0_42] : memref<1x16x16xf32, #tpu.memory_space<vmem>>, vector<1x16x16xf32>
    %68 = vector.shape_cast %67 : vector<1x16x16xf32> to vector<16x16xf32>
    %69 = vector.shape_cast %66 : vector<16x16xf32> to vector<1x16x16xf32>
    tpu.vector_store %arg10[%c0_40, %c0_41, %c0_42], %69 {strides = array<i32>} : memref<1x16x16xf32, #tpu.memory_space<vmem>>, vector<1x16x16xf32>,
    return
  }
  func.func @transform_0(%arg0: i32, %arg1: i32) -> (i32, i32) {
    %c0_i32 = arith.constant 0 : i32
    %c0_i32_0 = arith.constant 0 : i32
    return %arg1, %c0_i32 : i32, i32
  }
  func.func @transform_1(%arg0: i32, %arg1: i32) -> (i32, i32, i32) {
    %c0_i32 = arith.constant 0 : i32
    %c0_i32_0 = arith.constant 0 : i32
    %c0_i32_1 = arith.constant 0 : i32
    return %arg0, %c0_i32, %c0_i32_0 : i32, i32, i32
  }
  func.func @transform_2(%arg0: i32, %arg1: i32) -> (i32, i32, i32) {
    %c0_i32 = arith.constant 0 : i32
    %c0_i32_0 = arith.constant 0 : i32
    %c0_i32_1 = arith.constant 0 : i32
    return %arg0, %c0_i32, %c0_i32_0 : i32, i32, i32
  }
  func.func @transform_3(%arg0: i32, %arg1: i32) -> (i32, i32, i32) {
    %c0_i32 = arith.constant 0 : i32
    %c0_i32_0 = arith.constant 0 : i32
    %c0_i32_1 = arith.constant 0 : i32
    return %arg0, %c0_i32, %c0_i32_0 : i32, i32, i32
  }
  func.func @transform_4(%arg0: i32, %arg1: i32) -> (i32, i32, i32) {
    %c0_i32 = arith.constant 0 : i32
    %c0_i32_0 = arith.constant 0 : i32
    %c0_i32_1 = arith.constant 0 : i32
    return %arg0, %c0_i32, %c0_i32_0 : i32, i32, i32
  }
  func.func @transform_5(%arg0: i32, %arg1: i32) -> (i32, i32, i32, i32) {
    %c0_i32 = arith.constant 0 : i32
    %c0_i32_0 = arith.constant 0 : i32
    %c0_i32_1 = arith.constant 0 : i32
    %c0_i32_2 = arith.constant 0 : i32
    return %arg0, %c0_i32, %c0_i32_0, %c0_i32_1 : i32, i32, i32, i32
  }
  func.func @transform_6(%arg0: i32, %arg1: i32) -> (i32, i32, i32) {
    %c0_i32 = arith.constant 0 : i32
    %c0_i32_0 = arith.constant 0 : i32
    %c0_i32_1 = arith.constant 0 : i32
    return %arg0, %c0_i32, %c0_i32_0 : i32, i32, i32
  }
  func.func @transform_7(%arg0: i32, %arg1: i32) -> (i32, i32) {
    %c0_i32 = arith.constant 0 : i32
    %c0_i32_0 = arith.constant 0 : i32
    %c0_i32_1 = arith.constant 0 : i32
    return %c0_i32, %c0_i32_0 : i32, i32
  }
  func.func @transform_8(%arg0: i32, %arg1: i32) -> (i32, i32, i32) {
    %c0_i32 = arith.constant 0 : i32
    %c0_i32_0 = arith.constant 0 : i32
    return %arg0, %arg1, %c0_i32 : i32, i32, i32
  }
}

</mosaic_0001>

<bundles_post_ra>
// kernel: tpu_custom_call.1
= control target key start
LH: loop header
LB: loop body
LE: loop exit
PB: predicated region body
PF: predicated region fallthrough
CT: control target
= control target key end

     0   :  { %s4943_s0 = inlined_call_operand.vmem [shape: bf16[16,12], index: 0, kind: input, shape index: {}]   ;;  %s4944_s1 = inlined_call_operand.vmem [shape: bf16[2,12,512], index: 1, kind: input, shape index: {}]   ;;  %s4945_s2 = inlined_call_operand.hbm [shape: bf16[2,512,512], index: 2, kind: input, shape index: {}]   ;;  %s4946_s3 = inlined_call_operand.hbm [shape: bf16[2,512,512], index: 3, kind: input, shape index: {}]   ;;  %s4947_s4 = inlined_call_operand.vmem [shape: bf16[2,512,16], index: 4, kind: input, shape index: {}]   ;;  %s4948_s5 = inlined_call_operand.vmem [shape: f32[2,3,1,512], index: 5, kind: input, shape index: {}]   ;;  %s4949_s6 = inlined_call_operand.vmem [shape: f32[2,1,16], index: 6, kind: input, shape index: {}]   ;;  %s4950_s7 = inlined_call_operand.vmem [shape: f32[2,8], index: 7, kind: input, shape index: {}]   ;;  %s4951_s8 = inlined_call_operand.hbm [shape: f32[2,16,16], index: 8, kind: output, shape index: {}]  }
   0x1   :  { %4959 = sst [smem:[#allocation14_spill]] %s4945_s2 }
   0x2   :  { %13 = vsyncpa [#allocation3], 0 }
   0x3   :  { %15 = vsyncpa [#allocation3 + $0x1], 0 }
   0x4   :  { %16 = vsyncpa [#allocation6], 0 }
   0x5   :  { %18 = vsyncpa [#allocation6 + $0x1], 0 }
   0x6   :  { %19 = vsyncpa [#allocation4], 0 }
   0x7   :  { %21 = vsyncpa [#allocation4 + $0x1], 0  ;;  %s4337_s27 = smov 0   ;;  %s4339_s28 = smov 0  }
   0x8   :  { %s4341_s29 = smov 0   ;;  %s4343_s30 = smov 0  }
   0x9   :  { %s4345_s9 = smov 0   ;;  %s4347_s10 = smov 0  }
   0xa LB: > { %4960 = sst [smem:[#allocation11_spill]] %s4269_s29  ;;  %s3215_s11 = sadd.s32 4294967295, %s4281_s10   ;;  %s4281_s10 = sphi %s4347_s10, %s27_s10   ;;  %s4277_s9 = sphi %s4345_s9, %s4985_s9   ;;  %s4273_s30 = sphi %s4343_s30, %s4984_s30   ;;  %s4269_s29 = sphi %s4341_s29, %s4980_s29   ;;  %s4265_s28 = sphi %s4339_s28, %s4983_s28   ;;  %s4261_s27 = sphi %s4337_s27, %s4982_s27  }
   0xb   : > { %s3216_s12 = sadd.s32 4294967294, %s4281_s10   ;;  %s39_s13 = sadd.s32 1, %s4277_s9 }
   0xc   : > { %s98_s14 = sadd.s32 1, %s4269_s29  ;;  %p41_p0 = scmp.ge.s32.totalorder %s39_s13, 2 }
   0xd   : > { %p105_p1 = scmp.ne.s32.totalorder %s4269_s29, %s4265_s28  ;;  %p106_p2 = scmp.eq.s32.totalorder %s4281_s10, 0 }
   0xe   : > { %p111_p3 = scmp.ne.s32.totalorder %s4265_s28, %s4261_s27  ;;  %s4987_s13 = smov (%p41_p0, %s39_s13), 0 }
   0xf   : > { %4961 = sst [smem:[#allocation12_spill]] %s4987_s13  ;;  %p4378_p4 = por %p106_p2, %p105_p1 }
  0x10   : > { %p112_p5 = scmp.eq.s32.totalorder %s3215_s11, 0  ;;  %s95_s16 = ssub.s32 %s4277_s9, %s4987_s13 }
  0x11   : > { %p262_p6 = scmp.eq.s32.totalorder %s3215_s11, 1  ;;  %p96_p7 = scmp.eq.s32.totalorder %s95_s16, 0 }
  0x12   : > { %p4384_p8 = por %p112_p5, %p111_p3  ;;  %p268_p10 = scmp.eq.s32.totalorder %s3216_s12, 1 }
  0x13   : > { %p4388_p9 = por %p262_p6, %p105_p1  ;;  %p3640_p13 = scmp.lt.s32.totalorder %s4281_s10, 2 }
  0x14   : > { %s4963_s17 = scalar_select %p4384_p8, 1, 0 }
  0x15   : > { %s4964_s18 = scalar_select %p4388_p9, 1, 0 }
  0x16   : > { %s4393_s19 = scalar_select %p96_p7, %s4269_s29, %s98_s14  }
  0x17   : > { %p4395_p11 = por %p268_p10, %p111_p3  ;;  %s4402_s21 = sand.u32 1, %s4269_s29  }
  0x18   : > { %4965 = sst [smem:[#allocation13_spill]] %s4393_s19  ;;  %s4952_s22 = sshll.u32 %s4402_s21, 10 }
  0x19   : > { %s4966_s20 = scalar_select %p4395_p11, 1, 0 }
  0x1a   : > { %s4953_s23 = sshll.u32 %s4277_s9, 14  ;;  %s4967_s2 = sld [smem:[#allocation14_spill]] }
  0x1b   : > { %s312_s11 = scalar_lea.vmem [#allocation2], %s4952_s22  ;;  %p4419_p0 = pnand %p3640_p13, %p4378_p4 }
  0x1c   : > { %s319_s12 = sshll.u32 %s312_s11, 4  ;;  %s4415_s12 = int_to_ptr.vmem [resolvable:$true] %s319_s12 }
  0x1d   : > { %p4137_p3 = pneg %p4419_p0 }
  0x20   : > { %s4411_s26 = scalar_lea.hbm %s4967_s2, %s4953_s23  ;;  %s4140_s15 = scalar_lea.hbm %s4967_s2, 32768 }
  0x21   : > { %s4135_s24 = scalar_lea.hbm %s4411_s26, 16384  ;;  %p4141_p4 = scmp.lt.u32.totalorder %s4411_s26, %s4967_s2 }
  0x22   : > { %p4136_p2 = scmp.ne.s32.totalorder %s4411_s26, %s4135_s24  ;;  %p4142_p7 = scmp.lt.u32.totalorder %s4140_s15, %s4135_s24 }
  0x23   : > { %p4144_p13 = scmp.lt.u32.totalorder %s4135_s24, %s4411_s26 }
  0x24   : > { %p4138_p5 = pnand %p4137_p3, %p4136_p2  ;;  %p4143_p10 = por %p4142_p7, %p4141_p4 }
  0x26   : > { %p4139_p6 = pneg %p4138_p5  ;;  %p4145_p12 = por %p4144_p13, %p4143_p10 }
  0x28   : > { %p4146_p1 = pnand %p4145_p12, %p4139_p6 }
  0x2a   : > { %4149 = shalt.err (!%p4146_p1)
}
  0x2b   : > { %s4150_s16 = scalar_lea.vmem %s4415_s12, 16384  ;;  %s4283_s25 = smov [#allocation2]  }
  0x2c   : > { %p4151_p2 = scmp.ne.s32.totalorder %s4415_s12, %s4150_s16  ;;  %s4155_s11 = sshll.u32 %s4283_s25, 4  ;;  %s4156_s11 = int_to_ptr.vmem [resolvable:$false] %s4155_s11 }
  0x2d   : > { %s4157_s22 = scalar_lea.vmem %s4156_s11, 32768  ;;  %p4158_p9 = scmp.lt.s32.totalorder %s4415_s12, %s4156_s11 }
  0x2e   : > { %p4153_p5 = pnand %p4151_p2, %p4137_p3  ;;  %p4159_p4 = scmp.lt.s32.totalorder %s4157_s22, %s4150_s16 }
  0x30   : > { %p4154_p11 = pneg %p4153_p5  ;;  %p4160_p7 = por %p4159_p4, %p4158_p9 }
  0x32   : > { %p4161_p10 = pnand %p4160_p7, %p4154_p11 }
  0x34   : > { %4164 = shalt.err (!%p4161_p10)
}
  0x35   : > { %s4957_s23 = smov 256   ;;  %s4285_s24 = smov 16  }
  0x36   : > { %s4969_s16 = scalar_lea.sflag [#allocation3], %s4402_s21  ;;  %p369_p9 = scmp.lt.s32.totalorder %s4281_s10, 3 }
  0x37   : > { %3632 = dma.hbm_to_vmem [thread:$0]  (!%p4419_p0), %s4411_s26, 16384, %s4415_s12, %s4969_s16, %s4957_s23, %s4957_s23, %s4285_s24  }
  0x38   : > { %s4970_s15 = sshll.u32 %s4277_s9, 14  ;;  %p4971_p11 = scmp.ge.s32.totalorder %s4281_s10, 1 }
  0x39   : > { %s4461_s22 = scalar_lea.hbm %s4946_s3, %s4970_s15  ;;  %s4973_s13 = sshll.u32 %s4402_s21, 10 }
  0x3a   : > { %p4465_p12 = pnand %p4971_p11, %p369_p9  ;;  %s333_s19 = scalar_lea.vmem [#allocation5], %s4973_s13 }
  0x3b   : > { %s340_s29 = sshll.u32 %s333_s19, 4  ;;  %s330_s26 = scalar_lea.sflag [#allocation6], %s4402_s21  ;;  %s4471_s29 = int_to_ptr.vmem [resolvable:$true] %s340_s29 }
  0x3c   : > { %s4165_s12 = scalar_lea.hbm %s4461_s22, 16384  ;;  %s4170_s25 = scalar_lea.hbm %s4946_s3, 32768 }
  0x3d   : > { %p4166_p1 = scmp.ne.s32.totalorder %s4461_s22, %s4165_s12  ;;  %p4171_p2 = scmp.lt.u32.totalorder %s4461_s22, %s4946_s3 }
  0x3e   : > { %p4172_p5 = scmp.lt.u32.totalorder %s4170_s25, %s4165_s12  ;;  %p4174_p7 = scmp.lt.u32.totalorder %s4165_s12, %s4461_s22 }
  0x3f   : > { %p4168_p6 = pnand %p4166_p1, %p4137_p3 }
  0x40   : > { %p4173_p4 = por %p4172_p5, %p4171_p2 }
  0x41   : > { %p4169_p13 = pneg %p4168_p6 }
  0x42   : > { %p4175_p10 = por %p4174_p7, %p4173_p4 }
  0x44   : > { %p4176_p9 = pnand %p4175_p10, %p4169_p13 }
  0x46   : > { %4179 = shalt.err (!%p4176_p9)
}
  0x47   : > { %s4180_s13 = scalar_lea.vmem %s4471_s29, 16384  ;;  %s4286_s19 = smov [#allocation5]  }
  0x48   : > { %p4181_p11 = scmp.ne.s32.totalorder %s4471_s29, %s4180_s13  ;;  %s4185_s16 = sshll.u32 %s4286_s19, 4  ;;  %s4186_s16 = int_to_ptr.vmem [resolvable:$false] %s4185_s16 }
  0x49   : > { %s4187_s23 = scalar_lea.vmem %s4186_s16, 32768  ;;  %p4188_p8 = scmp.lt.s32.totalorder %s4471_s29, %s4186_s16 }
  0x4a   : > { %p4183_p1 = pnand %p4181_p11, %p4137_p3  ;;  %p4189_p2 = scmp.lt.s32.totalorder %s4187_s23, %s4180_s13 }
  0x4c   : > { %p4184_p6 = pneg %p4183_p1  ;;  %p4190_p5 = por %p4189_p2, %p4188_p8 }
  0x4e   : > { %p4191_p4 = pnand %p4190_p5, %p4184_p6 }
  0x50   : > { %4194 = shalt.err (!%p4191_p4)
}
  0x51   : > { %s4974_s12 = smov 256   ;;  %373 = sbr.rel (%p4465_p12) target bundleno = 1443 (0x5a3), region = 52 }
  0x52   : > { %3635 = dma.hbm_to_vmem [thread:$0]  (!%p4419_p0), %s4461_s22, 16384, %s4471_s29, %s330_s26, %s4974_s12, %s4974_s12, %s4285_s24  }
  0x53   : > { %s4505_s15 = sand.u32 (!%p4465_p12), 1, %s4265_s28   ;;  %p4975_p8 = scmp.ne.s32.totalorder (!%p4465_p12), %s4963_s17, 0 }
  0x54   : > { %s3227_s25 = sshll.u32 (!%p4465_p12), %s4505_s15, 10  ;;  %s376_s11 = scalar_lea.sflag (!%p4465_p12), [#allocation3], %s4505_s15 }
  0x55   : > { %s4509_s14 = scalar_lea.vmem (!%p4465_p12), [#allocation2], %s3227_s25 }
  0x58   : > { %4248 = dma.done.wait (%p4975_p8), %s376_s11, 16384  }
  0x59   : > { %4250 = vsyncadd (%p4975_p8), %s376_s11, 4294950912  ;;  %s385_s29 = scalar_lea.sflag [#allocation6], %s4505_s15  ;;  %s4516_s2 = scalar_lea.vmem [#allocation5], %s3227_s25 }
  0x5a   : > { %4252 = dma.done.wait (%p4975_p8), %s385_s29, 16384  }
  0x5b   : > { %4254 = vsyncadd (%p4975_p8), %s385_s29, 4294950912  ;;  %p454_p0 = scmp.lt.s32.totalorder %s4273_s30, 1  ;;  %v4287_v0 = vmov 0   ;;  %vm526_vm0 = vcmask 1045504   ;;  %v3699_v3 = vld [vmem:[%s4943_s0] sm:$0xff]   ;;  %vm522_vm1 = vcmask 97280  }
  0x5c   : > { %571 = vmatprep.mubr.bf16.mxu0 %v4287_v0  ;;  %614 = vmatprep.mubr.bf16.mxu1 %v4287_v0  ;;  %v3703_v7 = vld [vmem:[%s4509_s14] ss:$16 sps:$4 sm:$0xff]   ;;  %v3705_v8 = vld [vmem:[%s4509_s14 + $0x4] ss:$16 sps:$4 sm:$0xff]   ;;  %v3708_v10 = vld [vmem:[%s4509_s14 + $0xc] ss:$16 sps:$4 sm:$0xff]  }
  0x5d   : > { %s4524_s21 = scalar_select %p454_p0, %s4273_s30, 1  ;;  %v3706_v11 = vld [vmem:[%s4509_s14 + $0x8] ss:$16 sps:$4 sm:$0xff]   ;;  %v3711_v12 = vld [vmem:[%s4509_s14 + $0x24] ss:$16 sps:$4 sm:$0xff]   ;;  %vm3026_vm6 = vcmask 64512  }
  0x5e   : > { %v3714_v13 = vld [vmem:[%s4509_s14 + $0x2c] ss:$16 sps:$4 sm:$0xff]   ;;  %v3709_v14 = vld [vmem:[%s4509_s14 + $0x20] ss:$16 sps:$4 sm:$0xff]   ;;  %v3717_v15 = vld [vmem:[%s4509_s14 + $0x44] ss:$16 sps:$4 sm:$0xff]  }
  0x5f   : > { %s3543_s24 = sshll.u32 %s4524_s21, 5  ;;  %v3712_v16 = vld [vmem:[%s4509_s14 + $0x28] ss:$16 sps:$4 sm:$0xff]   ;;  %v3720_v17 = vld [vmem:[%s4509_s14 + $0x4c] ss:$16 sps:$4 sm:$0xff]   ;;  %s3544_s16 = sshll.u32 %s4524_s21, 8 }
  0x60   : > { %s458_s13 = scalar_lea.vmem %s4944_s1, %s3543_s24  ;;  %v3715_v18 = vld [vmem:[%s4509_s14 + $0x40] ss:$16 sps:$4 sm:$0xff]   ;;  %v3723_v19 = vld [vmem:[%s4509_s14 + $0x64] ss:$16 sps:$4 sm:$0xff]   ;;  %v3718_v20 = vld [vmem:[%s4509_s14 + $0x48] ss:$16 sps:$4 sm:$0xff]   ;;  %s4605_s25 = scalar_lea.vmem %s4947_s4, %s3544_s16 }
  0x61   : > { %v3696_v1 = vld [vmem:[%s458_s13 + $0x4] ss:$16 sps:$4 sm:$0x3f]   ;;  %v3698_v2 = vld [vmem:[%s458_s13] ss:$16 sps:$4 sm:$0x3f]   ;;  %s470_s26 = scalar_lea.vmem %s4949_s6, %s4524_s21 }
  0x62   : > { %3239 = vmatprep.subr.msk.bf16.mxu0 %vm526_vm0, %v3696_v1  ;;  %v528_v4 = vsel %vm526_vm0, %v3698_v2, 0  ;;  %v3700_v5 = vld [vmem:[%s458_s13 + $0xc] ss:$16 sps:$4 sm:$0x3f]   ;;  %v3721_v22 = vld [vmem:[%s4509_s14 + $0x60] ss:$16 sps:$4 sm:$0xff]  }
  0x63   : > { %540 = vmatpush1.bf16.msra.mxu0 %v528_v4  ;;  %v3702_v6 = vld [vmem:[%s458_s13 + $0x8] ss:$16 sps:$4 sm:$0x3f]   ;;  %3241 = vmatprep.subr.msk.bf16.mxu1 %vm526_vm0, %v3700_v5  ;;  %v3726_v21 = vld [vmem:[%s4509_s14 + $0x6c] ss:$16 sps:$4 sm:$0xff]   ;;  %s3622_s11 = smul.u32 12, %s4524_s21 }
  0x64   : > { %v534_v9 = vsel %vm526_vm0, %v3702_v6, 0  ;;  %1428 = vmatprep.subr.bf16.mxu0 %v3705_v8  ;;  %v3729_v23 = vld [vmem:[%s4509_s14 + $0x84] ss:$16 sps:$4 sm:$0xff]   ;;  %v3724_v24 = vld [vmem:[%s4509_s14 + $0x68] ss:$16 sps:$4 sm:$0xff]   ;;  %s4288_s21 = smov 120  }
  0x65   : > { %583 = vmatpush1.bf16.msra.mxu1 %v534_v9  ;;  %v3732_v25 = vld [vmem:[%s4509_s14 + $0x8c] ss:$16 sps:$4 sm:$0xff]   ;;  %v3727_v26 = vld [vmem:[%s4509_s14 + $0x80] ss:$16 sps:$4 sm:$0xff]   ;;  %v3735_v27 = vld [vmem:[%s4509_s14 + $0xa4] ss:$16 sps:$4 sm:$0xff]   ;;  %s4611_s22 = scalar_lea.vmem %s4948_s5, %s3622_s11 }
  0x66   : > { %3240 = vmatmul.mubr.msk.bf16.vlgmr.msra.gmra.mrb[0].mxu0 %vm522_vm1, %v3699_v3  ;;  %1514 = vmatprep.subr.bf16.mxu1 %v3708_v10  ;;  %v3730_v28 = vld [vmem:[%s4509_s14 + $0x88] ss:$16 sps:$4 sm:$0xff]   ;;  %v3738_v29 = vld [vmem:[%s4509_s14 + $0xac] ss:$16 sps:$4 sm:$0xff]   ;;  %v3733_v30 = vld [vmem:[%s4509_s14 + $0xa0] ss:$16 sps:$4 sm:$0xff]   ;;  %v481_v10 = vlaneseq }
  0x67   : > { %1429 = vmatpush1.bf16.msra.mxu0 %v3703_v7  ;;  %v3741_v31 = vld [vmem:[%s4509_s14 + $0xc4] ss:$16 sps:$4 sm:$0xff]   ;;  %v3736_v32 = vld [vmem:[%s4509_s14 + $0xa8] ss:$16 sps:$4 sm:$0xff]   ;;  %v3744_v33 = vld [vmem:[%s4509_s14 + $0xcc] ss:$16 sps:$4 sm:$0xff]  }
  0x68   : > { %3242 = vmatmul.mubr.msk.bf16.vlgmr.msra.gmra.mrb[0].mxu1 %vm522_vm1, %v3699_v3  ;;  %1430 = vmatprep.subr.bf16.mxu0 %v3711_v12  ;;  %v3739_v34 = vld [vmem:[%s4509_s14 + $0xc0] ss:$16 sps:$4 sm:$0xff]   ;;  %v3747_v35 = vld [vmem:[%s4509_s14 + $0xe4] ss:$16 sps:$4 sm:$0xff]   ;;  %v3742_v36 = vld [vmem:[%s4509_s14 + $0xc8] ss:$16 sps:$4 sm:$0xff]  }
  0x69   : > { %1515 = vmatpush1.bf16.msra.mxu1 %v3706_v11  ;;  %v3750_v37 = vld [vmem:[%s4509_s14 + $0xec] ss:$16 sps:$4 sm:$0xff]   ;;  %v3745_v38 = vld [vmem:[%s4509_s14 + $0xe0] ss:$16 sps:$4 sm:$0xff]   ;;  %v3753_v39 = vld [vmem:[%s4509_s14 + $0x104] ss:$16 sps:$4 sm:$0xff]  }
  0x6a   : > { %1516 = vmatprep.subr.bf16.mxu1 %v3714_v13  ;;  %v3748_v40 = vld [vmem:[%s4509_s14 + $0xe8] ss:$16 sps:$4 sm:$0xff]   ;;  %v3756_v41 = vld [vmem:[%s4509_s14 + $0x10c] ss:$16 sps:$4 sm:$0xff]   ;;  %v3751_v42 = vld [vmem:[%s4509_s14 + $0x100] ss:$16 sps:$4 sm:$0xff]  }
  0x6b   : > { %1431 = vmatpush1.bf16.msra.mxu0 %v3709_v14  ;;  %v3759_v43 = vld [vmem:[%s4509_s14 + $0x124] ss:$16 sps:$4 sm:$0xff]   ;;  %v3754_v44 = vld [vmem:[%s4509_s14 + $0x108] ss:$16 sps:$4 sm:$0xff]   ;;  %v3757_v45 = vld [vmem:[%s4509_s14 + $0x120] ss:$16 sps:$4 sm:$0xff]  }
  0x6c   : > { %1432 = vmatprep.subr.bf16.mxu0 %v3717_v15  ;;  %v3762_v46 = vld [vmem:[%s4509_s14 + $0x12c] ss:$16 sps:$4 sm:$0xff]   ;;  %v3760_v47 = vld [vmem:[%s4509_s14 + $0x128] ss:$16 sps:$4 sm:$0xff]   ;;  %v3765_v48 = vld [vmem:[%s4509_s14 + $0x144] ss:$16 sps:$4 sm:$0xff]  }
  0x6d   : > { %1517 = vmatpush1.bf16.msra.mxu1 %v3712_v16  ;;  %v3768_v49 = vld [vmem:[%s4509_s14 + $0x14c] ss:$16 sps:$4 sm:$0xff]   ;;  %v3763_v50 = vld [vmem:[%s4509_s14 + $0x140] ss:$16 sps:$4 sm:$0xff]   ;;  %v3771_v51 = vld [vmem:[%s4509_s14 + $0x164] ss:$16 sps:$4 sm:$0xff]  }
  0x6e   : > { %1518 = vmatprep.subr.bf16.mxu1 %v3720_v17  ;;  %v3766_v52 = vld [vmem:[%s4509_s14 + $0x148] ss:$16 sps:$4 sm:$0xff]   ;;  %v3774_v53 = vld [vmem:[%s4509_s14 + $0x16c] ss:$16 sps:$4 sm:$0xff]   ;;  %v3769_v54 = vld [vmem:[%s4509_s14 + $0x160] ss:$16 sps:$4 sm:$0xff]  }
  0x6f   : > { %1433 = vmatpush1.bf16.msra.mxu0 %v3715_v18  ;;  %v3777_v55 = vld [vmem:[%s4509_s14 + $0x184] ss:$16 sps:$4 sm:$0xff]   ;;  %v3772_v56 = vld [vmem:[%s4509_s14 + $0x168] ss:$16 sps:$4 sm:$0xff]   ;;  %v3780_v57 = vld [vmem:[%s4509_s14 + $0x18c] ss:$16 sps:$4 sm:$0xff]  }
  0x70   : > { %1434 = vmatprep.subr.bf16.mxu0 %v3723_v19  ;;  %v3775_v58 = vld [vmem:[%s4509_s14 + $0x180] ss:$16 sps:$4 sm:$0xff]   ;;  %v3783_v59 = vld [vmem:[%s4509_s14 + $0x1a4] ss:$16 sps:$4 sm:$0xff]   ;;  %v3778_v60 = vld [vmem:[%s4509_s14 + $0x188] ss:$16 sps:$4 sm:$0xff]  }
  0x71   : > { %1519 = vmatpush1.bf16.msra.mxu1 %v3718_v20  ;;  %v3786_v61 = vld [vmem:[%s4509_s14 + $0x1ac] ss:$16 sps:$4 sm:$0xff]   ;;  %v3781_v62 = vld [vmem:[%s4509_s14 + $0x1a0] ss:$16 sps:$4 sm:$0xff]   ;;  %v3784_v63 = vld [vmem:[%s4509_s14 + $0x1a8] ss:$16 sps:$4 sm:$0xff]  }
  0x72   : > { %1520 = vmatprep.subr.bf16.mxu1 %v3726_v21  ;;  %v3789_v0 = vld [vmem:[%s4509_s14 + $0x1c4] ss:$16 sps:$4 sm:$0xff]   ;;  %v3792_v1 = vld [vmem:[%s4509_s14 + $0x1cc] ss:$16 sps:$4 sm:$0xff]   ;;  %v3787_v2 = vld [vmem:[%s4509_s14 + $0x1c0] ss:$16 sps:$4 sm:$0xff]  }
  0x73   : > { %1435 = vmatpush1.bf16.msra.mxu0 %v3721_v22  ;;  %v3790_v3 = vld [vmem:[%s4509_s14 + $0x1c8] ss:$16 sps:$4 sm:$0xff]   ;;  %v3795_v4 = vld [vmem:[%s4509_s14 + $0x1e4] ss:$16 sps:$4 sm:$0xff]   ;;  %v3798_v5 = vld [vmem:[%s4509_s14 + $0x1ec] ss:$16 sps:$4 sm:$0xff]  }
  0x74   : > { %1436 = vmatprep.subr.bf16.mxu0 %v3729_v23  ;;  %v3793_v6 = vld [vmem:[%s4509_s14 + $0x1e0] ss:$16 sps:$4 sm:$0xff]   ;;  %v3796_v7 = vld [vmem:[%s4509_s14 + $0x1e8] ss:$16 sps:$4 sm:$0xff]   ;;  %v3801_v8 = vld [vmem:[%s4509_s14 + $0x204] ss:$16 sps:$4 sm:$0xff]  }
  0x75   : > { %1521 = vmatpush1.bf16.msra.mxu1 %v3724_v24  ;;  %v3804_v9 = vld [vmem:[%s4509_s14 + $0x20c] ss:$16 sps:$4 sm:$0xff]   ;;  %v482_v11 = vshrl.u32 %v481_v10, 7  ;;  %v479_v13 = vld [vmem:[%s4611_s22] sm:$0xf]  ;;  %s4289_s23 = smov 8  }
  0x76   : > { %1522 = vmatprep.subr.bf16.mxu1 %v3732_v25  ;;  %v3838_v10 = vld [vmem:[%s4509_s14 + $0x2c8] ss:$16 sps:$4 sm:$0xff]   ;;  %s3229_s12 = sshll.u32 %s4505_s15, 4  ;;  %vm3029_vm7 = vcmask 130048   ;;  %s3545_s29 = sshll.u32 %s4273_s30, 8 }
  0x77   : > { %1437 = vmatpush1.bf16.msra.mxu0 %v3727_v26  ;;  %v4613_v12 = vsub.s32 0, %v482_v11  ;;  %v4616_v14 = vsub.s32 1, %v482_v11  ;;  %v4618_v15 = vsub.s32 2, %v482_v11  ;;  %v4621_v17 = vsub.s32 3, %v482_v11  ;;  %v3843_v11 = vld [vmem:[%s4509_s14 + $0x2e4] ss:$16 sps:$4 sm:$0xff]  }
  0x78   : > { %1438 = vmatprep.subr.bf16.mxu0 %v3735_v27  ;;  %p4976_p12 = scmp.ne.s32.totalorder %s4964_s18, 0  ;;  %s4290_s30 = smov [#allocation7]  }
  0x79   : > { %1523 = vmatpush1.bf16.msra.mxu1 %v3730_v28  ;;  %v484_v16 = vrot.slane %v479_v13, %v4613_v12  ;;  %v488_v18 = vrot.slane %v479_v13, %v4616_v14  ;;  %v492_v20 = vrot.slane %v479_v13, %v4618_v15  ;;  %v496_v23 = vrot.slane %v479_v13, %v4621_v17  ;;  %v3846_v13 = vld [vmem:[%s4509_s14 + $0x2ec] ss:$16 sps:$4 sm:$0xff]  }
  0x7a   : > { %1524 = vmatprep.subr.bf16.mxu1 %v3738_v29 }
  0x7b   : > { %1439 = vmatpush1.bf16.msra.mxu0 %v3733_v30 }
  0x7c   : > { %1440 = vmatprep.subr.bf16.mxu0 %v3741_v31 }
  0x7d   : > { %1525 = vmatpush1.bf16.msra.mxu1 %v3736_v32 }
  0x7e   : > { %1526 = vmatprep.subr.bf16.mxu1 %v3744_v33 }
  0x7f   : > { %1441 = vmatpush1.bf16.msra.mxu0 %v3739_v34 }
  0x80   : > { %1442 = vmatprep.subr.bf16.mxu0 %v3747_v35 }
  0x81   : > { %1527 = vmatpush1.bf16.msra.mxu1 %v3742_v36 }
  0x82   : > { %1528 = vmatprep.subr.bf16.mxu1 %v3750_v37 }
  0x83   : > { %1443 = vmatpush1.bf16.msra.mxu0 %v3745_v38 }
  0x84   : > { %1444 = vmatprep.subr.bf16.mxu0 %v3753_v39 }
  0x85   : > { %1529 = vmatpush1.bf16.msra.mxu1 %v3748_v40 }
  0x86   : > { %1530 = vmatprep.subr.bf16.mxu1 %v3756_v41 }
  0x87   : > { %1445 = vmatpush1.bf16.msra.mxu0 %v3751_v42 }
  0x88   : > { %1446 = vmatprep.subr.bf16.mxu0 %v3759_v43 }
  0x89   : > { %1531 = vmatpush1.bf16.msra.mxu1 %v3754_v44 }
  0x8a   : > { %1532 = vmatprep.subr.bf16.mxu1 %v3762_v46  ;;  %v3802_v46 = vld [vmem:[%s4509_s14 + $0x208] ss:$16 sps:$4 sm:$0xff]  }
  0x8b   : > { %1447 = vmatpush1.bf16.msra.mxu0 %v3757_v45  ;;  %v3799_v45 = vld [vmem:[%s4509_s14 + $0x200] ss:$16 sps:$4 sm:$0xff]  }
  0x8c   : > { %1448 = vmatprep.subr.bf16.mxu0 %v3765_v48  ;;  %v3807_v48 = vld [vmem:[%s4509_s14 + $0x224] ss:$16 sps:$4 sm:$0xff]  }
  0x8d   : > { %1533 = vmatpush1.bf16.msra.mxu1 %v3760_v47 }
  0x8e   : > { %1534 = vmatprep.subr.bf16.mxu1 %v3768_v49  ;;  %v3810_v49 = vld [vmem:[%s4509_s14 + $0x22c] ss:$16 sps:$4 sm:$0xff]  }
  0x8f   : > { %1449 = vmatpush1.bf16.msra.mxu0 %v3763_v50 }
  0x90   : > { %1450 = vmatprep.subr.bf16.mxu0 %v3771_v51 }
  0x91   : > { %1535 = vmatpush1.bf16.msra.mxu1 %v3766_v52 }
  0x92   : > { %1536 = vmatprep.subr.bf16.mxu1 %v3774_v53  ;;  %v3805_v53 = vld [vmem:[%s4509_s14 + $0x220] ss:$16 sps:$4 sm:$0xff]  }
  0x93   : > { %1451 = vmatpush1.bf16.msra.mxu0 %v3769_v54  ;;  %v3808_v54 = vld [vmem:[%s4509_s14 + $0x228] ss:$16 sps:$4 sm:$0xff]  }
  0x94   : > { %1452 = vmatprep.subr.bf16.mxu0 %v3777_v55  ;;  %v3813_v55 = vld [vmem:[%s4509_s14 + $0x244] ss:$16 sps:$4 sm:$0xff]  }
  0x95   : > { %1537 = vmatpush1.bf16.msra.mxu1 %v3772_v56  ;;  %v3816_v56 = vld [vmem:[%s4509_s14 + $0x24c] ss:$16 sps:$4 sm:$0xff]  }
  0x96   : > { %1538 = vmatprep.subr.bf16.mxu1 %v3780_v57  ;;  %v3811_v57 = vld [vmem:[%s4509_s14 + $0x240] ss:$16 sps:$4 sm:$0xff]  }
  0x97   : > { %1453 = vmatpush1.bf16.msra.mxu0 %v3775_v58  ;;  %v3814_v58 = vld [vmem:[%s4509_s14 + $0x248] ss:$16 sps:$4 sm:$0xff]  }
  0x98   : > { %1454 = vmatprep.subr.bf16.mxu0 %v3783_v59  ;;  %v3819_v59 = vld [vmem:[%s4509_s14 + $0x264] ss:$16 sps:$4 sm:$0xff]  }
  0x99   : > { %1539 = vmatpush1.bf16.msra.mxu1 %v3778_v60  ;;  %v3822_v60 = vld [vmem:[%s4509_s14 + $0x26c] ss:$16 sps:$4 sm:$0xff]  }
  0x9a   : > { %1540 = vmatprep.subr.bf16.mxu1 %v3786_v61  ;;  %v3817_v61 = vld [vmem:[%s4509_s14 + $0x260] ss:$16 sps:$4 sm:$0xff]  }
  0x9b   : > { %1455 = vmatpush1.bf16.msra.mxu0 %v3781_v62  ;;  %v3820_v62 = vld [vmem:[%s4509_s14 + $0x268] ss:$16 sps:$4 sm:$0xff]  }
  0x9c   : > { %1456 = vmatprep.subr.bf16.mxu0 %v3789_v0  ;;  %v3828_v0 = vld [vmem:[%s4509_s14 + $0x28c] ss:$16 sps:$4 sm:$0xff]  }
  0x9d   : > { %1541 = vmatpush1.bf16.msra.mxu1 %v3784_v63  ;;  %v3825_v63 = vld [vmem:[%s4509_s14 + $0x284] ss:$16 sps:$4 sm:$0xff]  }
  0x9e   : > { %1542 = vmatprep.subr.bf16.mxu1 %v3792_v1  ;;  %v3823_v1 = vld [vmem:[%s4509_s14 + $0x280] ss:$16 sps:$4 sm:$0xff]  }
  0x9f   : > { %1457 = vmatpush1.bf16.msra.mxu0 %v3787_v2  ;;  %v3826_v2 = vld [vmem:[%s4509_s14 + $0x288] ss:$16 sps:$4 sm:$0xff]  }
  0xa0   : > { %1458 = vmatprep.subr.bf16.mxu0 %v3795_v4  ;;  %v3834_v4 = vld [vmem:[%s4509_s14 + $0x2ac] ss:$16 sps:$4 sm:$0xff]  }
  0xa1   : > { %1543 = vmatpush1.bf16.msra.mxu1 %v3790_v3  ;;  %v3831_v3 = vld [vmem:[%s4509_s14 + $0x2a4] ss:$16 sps:$4 sm:$0xff]  }
  0xa2   : > { %1544 = vmatprep.subr.bf16.mxu1 %v3798_v5  ;;  %v3829_v5 = vld [vmem:[%s4509_s14 + $0x2a0] ss:$16 sps:$4 sm:$0xff]  }
  0xa3   : > { %1459 = vmatpush1.bf16.msra.mxu0 %v3793_v6  ;;  %v3832_v6 = vld [vmem:[%s4509_s14 + $0x2a8] ss:$16 sps:$4 sm:$0xff]  }
  0xa4   : > { %1471 = vmatprep.subr.bf16.mxu0 %v3801_v8  ;;  %v3840_v8 = vld [vmem:[%s4509_s14 + $0x2cc] ss:$16 sps:$4 sm:$0xff]  }
  0xa5   : > { %1545 = vmatpush1.bf16.msra.mxu1 %v3796_v7  ;;  %v3837_v7 = vld [vmem:[%s4509_s14 + $0x2c4] ss:$16 sps:$4 sm:$0xff]  }
  0xa6   : > { %1557 = vmatprep.subr.bf16.mxu1 %v3804_v9  ;;  %v3835_v9 = vld [vmem:[%s4509_s14 + $0x2c0] ss:$16 sps:$4 sm:$0xff]  }
 0x139   : > { %v573_v19 = vpop.f32.mrb[0].mxu0 }
 0x13a   : > { %v574_v21 = vadd.f32 %v573_v19, %v484_v16  ;;  %v575_v22 = vpop.f32.mrb[1].mxu0  ;;  %v3849_v19 = vld [vmem:[%s4509_s14 + $0x304] ss:$16 sps:$4 sm:$0xff]  }
 0x13b   : > { %v576_v24 = vadd.f32 %v575_v22, %v488_v18  ;;  %v577_v25 = vpop.f32.mrb[2].mxu0  ;;  %v616_v28 = vpop.f32.mrb[0].mxu1  ;;  %v3850_v22 = vld [vmem:[%s4509_s14 + $0x308] ss:$16 sps:$4 sm:$0xff]  }
 0x13c   : > { %v578_v26 = vadd.f32 %v577_v25, %v484_v16  ;;  %v579_v27 = vpop.f32.mrb[3].mxu0  ;;  %v617_v30 = vadd.f32 %v616_v28, %v492_v20  ;;  %v618_v31 = vpop.f32.mrb[1].mxu1  ;;  %v625_v32 = vmax.f32 %v574_v21, 0.0  ;;  %v3841_v16 = vld [vmem:[%s4509_s14 + $0x2e0] ss:$16 sps:$4 sm:$0xff]  }
 0x13d   : > { %v580_v29 = vadd.f32 %v579_v27, %v488_v18  ;;  %v619_v34 = vadd.f32 %v618_v31, %v496_v23  ;;  %v620_v35 = vpop.f32.mrb[2].mxu1  ;;  %v626_v36 = vmax.f32 %v576_v24, 0.0  ;;  %v3844_v18 = vld [vmem:[%s4509_s14 + $0x2e8] ss:$16 sps:$4 sm:$0xff]   ;;  %v3847_v21 = vld [vmem:[%s4509_s14 + $0x300] ss:$16 sps:$4 sm:$0xff]  }
 0x13e   : > { %v629_v33 = vmax.f32 %v578_v26, 0.0  ;;  %v627_v38 = vmax.f32 %v617_v30, 0.0  ;;  %v621_v39 = vadd.f32 %v620_v35, %v492_v20  ;;  %v622_v40 = vpop.f32.mrb[3].mxu1  ;;  %v3852_v20 = vld [vmem:[%s4509_s14 + $0x30c] ss:$16 sps:$4 sm:$0xff]  }
 0x13f   : > { %v630_v37 = vmax.f32 %v580_v29, 0.0  ;;  %v628_v42 = vmax.f32 %v619_v34, 0.0  ;;  %v623_v43 = vadd.f32 %v622_v40, %v496_v23  ;;  %v3855_v23 = vld [vmem:[%s4509_s14 + $0x324] ss:$16 sps:$4 sm:$0xff]   ;;  %v3858_v24 = vld [vmem:[%s4509_s14 + $0x32c] ss:$16 sps:$4 sm:$0xff]  }
 0x140   : > { %v633_v41 = vpack.c.bf16 %v629_v33, %v625_v32  ;;  %v631_v47 = vmax.f32 %v621_v39, 0.0  ;;  %v3853_v25 = vld [vmem:[%s4509_s14 + $0x320] ss:$16 sps:$4 sm:$0xff]   ;;  %v3856_v26 = vld [vmem:[%s4509_s14 + $0x328] ss:$16 sps:$4 sm:$0xff]  }
 0x141   : > { %v634_v44 = vpack.c.bf16 %v630_v37, %v626_v36  ;;  %v632_v50 = vmax.f32 %v623_v43, 0.0  ;;  %v3861_v27 = vld [vmem:[%s4509_s14 + $0x344] ss:$16 sps:$4 sm:$0xff]   ;;  %v3864_v28 = vld [vmem:[%s4509_s14 + $0x34c] ss:$16 sps:$4 sm:$0xff]  }
 0x142   : > { %v4630_v51 = vpack.c.bf16 %v631_v47, %v627_v38  ;;  %v3859_v29 = vld [vmem:[%s4509_s14 + $0x340] ss:$16 sps:$4 sm:$0xff]   ;;  %v3862_v30 = vld [vmem:[%s4509_s14 + $0x348] ss:$16 sps:$4 sm:$0xff]   ;;  %v3867_v31 = vld [vmem:[%s4509_s14 + $0x364] ss:$16 sps:$4 sm:$0xff]  }
 0x143   : > { %1460 = vmatprep.mubr.bf16.mxu0 %v634_v44  ;;  %1546 = vmatprep.mubr.bf16.mxu1 %v634_v44  ;;  %v636_v52 = vpack.c.bf16 %v632_v50, %v628_v42  ;;  %v3870_v32 = vld [vmem:[%s4509_s14 + $0x36c] ss:$16 sps:$4 sm:$0xff]   ;;  %v3865_v33 = vld [vmem:[%s4509_s14 + $0x360] ss:$16 sps:$4 sm:$0xff]   ;;  %v3868_v34 = vld [vmem:[%s4509_s14 + $0x368] ss:$16 sps:$4 sm:$0xff]  }
 0x144   : > { %1461 = vmatmul.mubr.bf16.vlgmr.msra.gmra.mrb[4].mxu0 %v633_v41  ;;  %1547 = vmatmul.mubr.bf16.vlgmr.msra.gmra.mrb[4].mxu1 %v633_v41  ;;  %v3873_v35 = vld [vmem:[%s4509_s14 + $0x384] ss:$16 sps:$4 sm:$0xff]   ;;  %v3876_v36 = vld [vmem:[%s4509_s14 + $0x38c] ss:$16 sps:$4 sm:$0xff]   ;;  %v3871_v37 = vld [vmem:[%s4509_s14 + $0x380] ss:$16 sps:$4 sm:$0xff]  }
 0x145   : > { %1472 = vmatpush1.bf16.msra.mxu0 %v3799_v45  ;;  %1558 = vmatpush1.bf16.msra.mxu1 %v3802_v46  ;;  %v3874_v38 = vld [vmem:[%s4509_s14 + $0x388] ss:$16 sps:$4 sm:$0xff]   ;;  %v3879_v39 = vld [vmem:[%s4509_s14 + $0x3a4] ss:$16 sps:$4 sm:$0xff]   ;;  %v3882_v40 = vld [vmem:[%s4509_s14 + $0x3ac] ss:$16 sps:$4 sm:$0xff]  }
 0x146   : > { %1473 = vmatprep.subr.bf16.mxu0 %v3807_v48  ;;  %1559 = vmatprep.subr.bf16.mxu1 %v3810_v49  ;;  %v3877_v41 = vld [vmem:[%s4509_s14 + $0x3a0] ss:$16 sps:$4 sm:$0xff]   ;;  %v3880_v42 = vld [vmem:[%s4509_s14 + $0x3a8] ss:$16 sps:$4 sm:$0xff]   ;;  %v3885_v43 = vld [vmem:[%s4509_s14 + $0x3c4] ss:$16 sps:$4 sm:$0xff]  }
 0x147   : > { %1503 = vmatprep.mubr.bf16.mxu0 %v636_v52  ;;  %1589 = vmatprep.mubr.bf16.mxu1 %v636_v52  ;;  %v3888_v44 = vld [vmem:[%s4509_s14 + $0x3cc] ss:$16 sps:$4 sm:$0xff]   ;;  %v3883_v45 = vld [vmem:[%s4509_s14 + $0x3c0] ss:$16 sps:$4 sm:$0xff]   ;;  %v3886_v46 = vld [vmem:[%s4509_s14 + $0x3c8] ss:$16 sps:$4 sm:$0xff]  }
 0x148   : > { %v3891_v47 = vld [vmem:[%s4509_s14 + $0x3e4] ss:$16 sps:$4 sm:$0xff]   ;;  %v3894_v48 = vld [vmem:[%s4509_s14 + $0x3ec] ss:$16 sps:$4 sm:$0xff]   ;;  %v3889_v49 = vld [vmem:[%s4509_s14 + $0x3e0] ss:$16 sps:$4 sm:$0xff]  }
 0x149   : > { %1474 = vmatpush1.bf16.msra.mxu0 %v3805_v53  ;;  %1560 = vmatpush1.bf16.msra.mxu1 %v3808_v54  ;;  %v3892_v50 = vld [vmem:[%s4509_s14 + $0x3e8] ss:$16 sps:$4 sm:$0xff]   ;;  %v3897_v52 = vld [vmem:[%s4516_s2 + $0x4] ss:$16 sps:$4 sm:$0xff]   ;;  %v3900_v53 = vld [vmem:[%s4516_s2 + $0xc] ss:$16 sps:$4 sm:$0xff]   ;;  %s4892_s14 = scalar_lea.hbm %s4951_s8, %s3545_s29 }
 0x14a   : > { %1475 = vmatprep.subr.bf16.mxu0 %v3813_v55  ;;  %1561 = vmatprep.subr.bf16.mxu1 %v3816_v56  ;;  %v3895_v54 = vld [vmem:[%s4516_s2] ss:$16 sps:$4 sm:$0xff]   ;;  %v3898_v55 = vld [vmem:[%s4516_s2 + $0x8] ss:$16 sps:$4 sm:$0xff]   ;;  %v3903_v56 = vld [vmem:[%s4516_s2 + $0x24] ss:$16 sps:$4 sm:$0xff]  }
 0x14d   : > { %1476 = vmatpush1.bf16.msra.mxu0 %v3811_v57  ;;  %1562 = vmatpush1.bf16.msra.mxu1 %v3814_v58  ;;  %v3906_v57 = vld [vmem:[%s4516_s2 + $0x2c] ss:$16 sps:$4 sm:$0xff]   ;;  %v3901_v58 = vld [vmem:[%s4516_s2 + $0x20] ss:$16 sps:$4 sm:$0xff]  }
 0x14e   : > { %1477 = vmatprep.subr.bf16.mxu0 %v3819_v59  ;;  %1563 = vmatprep.subr.bf16.mxu1 %v3822_v60  ;;  %v3904_v59 = vld [vmem:[%s4516_s2 + $0x28] ss:$16 sps:$4 sm:$0xff]   ;;  %v3909_v60 = vld [vmem:[%s4516_s2 + $0x44] ss:$16 sps:$4 sm:$0xff]  }
 0x151   : > { %1478 = vmatpush1.bf16.msra.mxu0 %v3817_v61  ;;  %1564 = vmatpush1.bf16.msra.mxu1 %v3820_v62  ;;  %v3912_v61 = vld [vmem:[%s4516_s2 + $0x4c] ss:$16 sps:$4 sm:$0xff]   ;;  %v3907_v62 = vld [vmem:[%s4516_s2 + $0x40] ss:$16 sps:$4 sm:$0xff]  }
 0x152   : > { %1479 = vmatprep.subr.bf16.mxu0 %v3825_v63  ;;  %1565 = vmatprep.subr.bf16.mxu1 %v3828_v0  ;;  %v3910_v63 = vld [vmem:[%s4516_s2 + $0x48] ss:$16 sps:$4 sm:$0xff]   ;;  %v3918_v0 = vld [vmem:[%s4516_s2 + $0x6c] ss:$16 sps:$4 sm:$0xff]  }
 0x155   : > { %1480 = vmatpush1.bf16.msra.mxu0 %v3823_v1  ;;  %1566 = vmatpush1.bf16.msra.mxu1 %v3826_v2  ;;  %v3913_v1 = vld [vmem:[%s4516_s2 + $0x60] ss:$16 sps:$4 sm:$0xff]   ;;  %v3916_v2 = vld [vmem:[%s4516_s2 + $0x68] ss:$16 sps:$4 sm:$0xff]  }
 0x156   : > { %1481 = vmatprep.subr.bf16.mxu0 %v3831_v3  ;;  %1567 = vmatprep.subr.bf16.mxu1 %v3834_v4  ;;  %v3921_v3 = vld [vmem:[%s4516_s2 + $0x84] ss:$16 sps:$4 sm:$0xff]   ;;  %v3924_v4 = vld [vmem:[%s4516_s2 + $0x8c] ss:$16 sps:$4 sm:$0xff]  }
 0x159   : > { %1482 = vmatpush1.bf16.msra.mxu0 %v3829_v5  ;;  %1568 = vmatpush1.bf16.msra.mxu1 %v3832_v6  ;;  %v3919_v5 = vld [vmem:[%s4516_s2 + $0x80] ss:$16 sps:$4 sm:$0xff]   ;;  %v3922_v6 = vld [vmem:[%s4516_s2 + $0x88] ss:$16 sps:$4 sm:$0xff]  }
 0x15a   : > { %1483 = vmatprep.subr.bf16.mxu0 %v3837_v7  ;;  %1569 = vmatprep.subr.bf16.mxu1 %v3840_v8  ;;  %v3927_v7 = vld [vmem:[%s4516_s2 + $0xa4] ss:$16 sps:$4 sm:$0xff]   ;;  %v3930_v8 = vld [vmem:[%s4516_s2 + $0xac] ss:$16 sps:$4 sm:$0xff]  }
 0x15d   : > { %1484 = vmatpush1.bf16.msra.mxu0 %v3835_v9  ;;  %1570 = vmatpush1.bf16.msra.mxu1 %v3838_v10  ;;  %v3925_v9 = vld [vmem:[%s4516_s2 + $0xa0] ss:$16 sps:$4 sm:$0xff]   ;;  %v3928_v10 = vld [vmem:[%s4516_s2 + $0xa8] ss:$16 sps:$4 sm:$0xff]  }
 0x15e   : > { %1485 = vmatprep.subr.bf16.mxu0 %v3843_v11  ;;  %1571 = vmatprep.subr.bf16.mxu1 %v3846_v13  ;;  %v3933_v11 = vld [vmem:[%s4516_s2 + $0xc4] ss:$16 sps:$4 sm:$0xff]   ;;  %v3936_v13 = vld [vmem:[%s4516_s2 + $0xcc] ss:$16 sps:$4 sm:$0xff]  }
 0x161   : > { %1486 = vmatpush1.bf16.msra.mxu0 %v3841_v16  ;;  %1572 = vmatpush1.bf16.msra.mxu1 %v3844_v18  ;;  %v3931_v16 = vld [vmem:[%s4516_s2 + $0xc0] ss:$16 sps:$4 sm:$0xff]   ;;  %v3934_v18 = vld [vmem:[%s4516_s2 + $0xc8] ss:$16 sps:$4 sm:$0xff]  }
 0x162   : > { %1487 = vmatprep.subr.bf16.mxu0 %v3849_v19  ;;  %1573 = vmatprep.subr.bf16.mxu1 %v3852_v20  ;;  %v3939_v19 = vld [vmem:[%s4516_s2 + $0xe4] ss:$16 sps:$4 sm:$0xff]   ;;  %v3942_v20 = vld [vmem:[%s4516_s2 + $0xec] ss:$16 sps:$4 sm:$0xff]  }
 0x165   : > { %1488 = vmatpush1.bf16.msra.mxu0 %v3847_v21  ;;  %1574 = vmatpush1.bf16.msra.mxu1 %v3850_v22  ;;  %v3937_v21 = vld [vmem:[%s4516_s2 + $0xe0] ss:$16 sps:$4 sm:$0xff]   ;;  %v3940_v22 = vld [vmem:[%s4516_s2 + $0xe8] ss:$16 sps:$4 sm:$0xff]  }
 0x166   : > { %1489 = vmatprep.subr.bf16.mxu0 %v3855_v23  ;;  %1575 = vmatprep.subr.bf16.mxu1 %v3858_v24  ;;  %v3945_v23 = vld [vmem:[%s4516_s2 + $0x104] ss:$16 sps:$4 sm:$0xff]   ;;  %v3948_v24 = vld [vmem:[%s4516_s2 + $0x10c] ss:$16 sps:$4 sm:$0xff]  }
 0x169   : > { %1490 = vmatpush1.bf16.msra.mxu0 %v3853_v25  ;;  %1576 = vmatpush1.bf16.msra.mxu1 %v3856_v26  ;;  %v3943_v25 = vld [vmem:[%s4516_s2 + $0x100] ss:$16 sps:$4 sm:$0xff]   ;;  %v3946_v26 = vld [vmem:[%s4516_s2 + $0x108] ss:$16 sps:$4 sm:$0xff]  }
 0x16a   : > { %1491 = vmatprep.subr.bf16.mxu0 %v3861_v27  ;;  %1577 = vmatprep.subr.bf16.mxu1 %v3864_v28  ;;  %v3951_v27 = vld [vmem:[%s4516_s2 + $0x124] ss:$16 sps:$4 sm:$0xff]   ;;  %v3954_v28 = vld [vmem:[%s4516_s2 + $0x12c] ss:$16 sps:$4 sm:$0xff]  }
 0x16d   : > { %1492 = vmatpush1.bf16.msra.mxu0 %v3859_v29  ;;  %1578 = vmatpush1.bf16.msra.mxu1 %v3862_v30  ;;  %v3949_v29 = vld [vmem:[%s4516_s2 + $0x120] ss:$16 sps:$4 sm:$0xff]   ;;  %v3952_v30 = vld [vmem:[%s4516_s2 + $0x128] ss:$16 sps:$4 sm:$0xff]  }
 0x16e   : > { %1493 = vmatprep.subr.bf16.mxu0 %v3867_v31  ;;  %1579 = vmatprep.subr.bf16.mxu1 %v3870_v32  ;;  %v3957_v31 = vld [vmem:[%s4516_s2 + $0x144] ss:$16 sps:$4 sm:$0xff]   ;;  %v3960_v32 = vld [vmem:[%s4516_s2 + $0x14c] ss:$16 sps:$4 sm:$0xff]  }
 0x171   : > { %1494 = vmatpush1.bf16.msra.mxu0 %v3865_v33  ;;  %1580 = vmatpush1.bf16.msra.mxu1 %v3868_v34  ;;  %v3955_v33 = vld [vmem:[%s4516_s2 + $0x140] ss:$16 sps:$4 sm:$0xff]   ;;  %v3958_v34 = vld [vmem:[%s4516_s2 + $0x148] ss:$16 sps:$4 sm:$0xff]  }
 0x172   : > { %1495 = vmatprep.subr.bf16.mxu0 %v3873_v35  ;;  %1581 = vmatprep.subr.bf16.mxu1 %v3876_v36  ;;  %v3963_v35 = vld [vmem:[%s4516_s2 + $0x164] ss:$16 sps:$4 sm:$0xff]   ;;  %v3966_v36 = vld [vmem:[%s4516_s2 + $0x16c] ss:$16 sps:$4 sm:$0xff]  }
 0x175   : > { %1496 = vmatpush1.bf16.msra.mxu0 %v3871_v37  ;;  %1582 = vmatpush1.bf16.msra.mxu1 %v3874_v38  ;;  %v3961_v37 = vld [vmem:[%s4516_s2 + $0x160] ss:$16 sps:$4 sm:$0xff]   ;;  %v3964_v38 = vld [vmem:[%s4516_s2 + $0x168] ss:$16 sps:$4 sm:$0xff]  }
 0x176   : > { %1497 = vmatprep.subr.bf16.mxu0 %v3879_v39  ;;  %1583 = vmatprep.subr.bf16.mxu1 %v3882_v40  ;;  %v3969_v39 = vld [vmem:[%s4516_s2 + $0x184] ss:$16 sps:$4 sm:$0xff]   ;;  %v3972_v40 = vld [vmem:[%s4516_s2 + $0x18c] ss:$16 sps:$4 sm:$0xff]  }
 0x179   : > { %1498 = vmatpush1.bf16.msra.mxu0 %v3877_v41  ;;  %1584 = vmatpush1.bf16.msra.mxu1 %v3880_v42  ;;  %v3967_v41 = vld [vmem:[%s4516_s2 + $0x180] ss:$16 sps:$4 sm:$0xff]   ;;  %v3970_v42 = vld [vmem:[%s4516_s2 + $0x188] ss:$16 sps:$4 sm:$0xff]  }
 0x17a   : > { %1499 = vmatprep.subr.bf16.mxu0 %v3885_v43  ;;  %1585 = vmatprep.subr.bf16.mxu1 %v3888_v44  ;;  %v3975_v43 = vld [vmem:[%s4516_s2 + $0x1a4] ss:$16 sps:$4 sm:$0xff]   ;;  %v3978_v44 = vld [vmem:[%s4516_s2 + $0x1ac] ss:$16 sps:$4 sm:$0xff]  }
 0x17d   : > { %1500 = vmatpush1.bf16.msra.mxu0 %v3883_v45  ;;  %1586 = vmatpush1.bf16.msra.mxu1 %v3886_v46  ;;  %v3973_v45 = vld [vmem:[%s4516_s2 + $0x1a0] ss:$16 sps:$4 sm:$0xff]   ;;  %v3976_v46 = vld [vmem:[%s4516_s2 + $0x1a8] ss:$16 sps:$4 sm:$0xff]  }
 0x17e   : > { %1501 = vmatprep.subr.bf16.mxu0 %v3891_v47  ;;  %1587 = vmatprep.subr.bf16.mxu1 %v3894_v48  ;;  %v3981_v47 = vld [vmem:[%s4516_s2 + $0x1c4] ss:$16 sps:$4 sm:$0xff]   ;;  %v3984_v48 = vld [vmem:[%s4516_s2 + $0x1cc] ss:$16 sps:$4 sm:$0xff]  }
 0x181   : > { %1502 = vmatpush1.bf16.msra.mxu0 %v3889_v49  ;;  %1588 = vmatpush1.bf16.msra.mxu1 %v3892_v50  ;;  %v3979_v49 = vld [vmem:[%s4516_s2 + $0x1c0] ss:$16 sps:$4 sm:$0xff]   ;;  %v3982_v50 = vld [vmem:[%s4516_s2 + $0x1c8] ss:$16 sps:$4 sm:$0xff]  }
 0x182   : > { %2403 = vmatprep.subr.bf16.mxu0 %v3897_v52  ;;  %2489 = vmatprep.subr.bf16.mxu1 %v3900_v53  ;;  %v3987_v52 = vld [vmem:[%s4516_s2 + $0x1e4] ss:$16 sps:$4 sm:$0xff]   ;;  %v3990_v53 = vld [vmem:[%s4516_s2 + $0x1ec] ss:$16 sps:$4 sm:$0xff]  }
 0x184   : > { %1504 = vmatmul.mubr.bf16.vlgmr.msra.gmra.mrb[4].mxu0 %v4630_v51  ;;  %1590 = vmatmul.mubr.bf16.vlgmr.msra.gmra.mrb[4].mxu1 %v4630_v51  ;;  %v3915_v51 = vld [vmem:[%s4516_s2 + $0x64] ss:$16 sps:$4 sm:$0xff]  }
 0x185   : > { %2404 = vmatpush1.bf16.msra.mxu0 %v3895_v54  ;;  %2490 = vmatpush1.bf16.msra.mxu1 %v3898_v55  ;;  %v3985_v54 = vld [vmem:[%s4516_s2 + $0x1e0] ss:$16 sps:$4 sm:$0xff]   ;;  %v3988_v55 = vld [vmem:[%s4516_s2 + $0x1e8] ss:$16 sps:$4 sm:$0xff]  }
 0x186   : > { %2405 = vmatprep.subr.bf16.mxu0 %v3903_v56  ;;  %2491 = vmatprep.subr.bf16.mxu1 %v3906_v57  ;;  %v3993_v56 = vld [vmem:[%s4516_s2 + $0x204] ss:$16 sps:$4 sm:$0xff]   ;;  %v3996_v57 = vld [vmem:[%s4516_s2 + $0x20c] ss:$16 sps:$4 sm:$0xff]  }
 0x189   : > { %2406 = vmatpush1.bf16.msra.mxu0 %v3901_v58  ;;  %2492 = vmatpush1.bf16.msra.mxu1 %v3904_v59  ;;  %v3243_v58 = vld [vmem:[%s4611_s22 + $0x4] sm:$0xf] }
 0x18a   : > { %2407 = vmatprep.subr.bf16.mxu0 %v3909_v60  ;;  %2493 = vmatprep.subr.bf16.mxu1 %v3912_v61  ;;  %v771_v59 = vrot.slane %v3243_v58, %v4613_v12  ;;  %v779_v60 = vrot.slane %v3243_v58, %v4618_v15  ;;  %v775_v61 = vrot.slane %v3243_v58, %v4616_v14 }
 0x18d   : > { %2408 = vmatpush1.bf16.msra.mxu0 %v3907_v62  ;;  %2494 = vmatpush1.bf16.msra.mxu1 %v3910_v63  ;;  %v783_v62 = vrot.slane %v3243_v58, %v4621_v17  ;;  %v4038_v58 = vld [vmem:[%s4516_s2 + $0x2ec] ss:$16 sps:$4 sm:$0xff]  }
 0x18e   : > { %2409 = vmatprep.subr.bf16.mxu0 %v3915_v51  ;;  %2495 = vmatprep.subr.bf16.mxu1 %v3918_v0 }
 0x191   : > { %2410 = vmatpush1.bf16.msra.mxu0 %v3913_v1  ;;  %2496 = vmatpush1.bf16.msra.mxu1 %v3916_v2 }
 0x192   : > { %2411 = vmatprep.subr.bf16.mxu0 %v3921_v3  ;;  %2497 = vmatprep.subr.bf16.mxu1 %v3924_v4 }
 0x195   : > { %2412 = vmatpush1.bf16.msra.mxu0 %v3919_v5  ;;  %2498 = vmatpush1.bf16.msra.mxu1 %v3922_v6 }
 0x196   : > { %2413 = vmatprep.subr.bf16.mxu0 %v3927_v7  ;;  %2499 = vmatprep.subr.bf16.mxu1 %v3930_v8 }
 0x199   : > { %2414 = vmatpush1.bf16.msra.mxu0 %v3925_v9  ;;  %2500 = vmatpush1.bf16.msra.mxu1 %v3928_v10 }
 0x19a   : > { %2415 = vmatprep.subr.bf16.mxu0 %v3933_v11  ;;  %2501 = vmatprep.subr.bf16.mxu1 %v3936_v13 }
 0x19d   : > { %2416 = vmatpush1.bf16.msra.mxu0 %v3931_v16  ;;  %2502 = vmatpush1.bf16.msra.mxu1 %v3934_v18 }
 0x19e   : > { %2417 = vmatprep.subr.bf16.mxu0 %v3939_v19  ;;  %2503 = vmatprep.subr.bf16.mxu1 %v3942_v20 }
 0x1a1   : > { %2418 = vmatpush1.bf16.msra.mxu0 %v3937_v21  ;;  %2504 = vmatpush1.bf16.msra.mxu1 %v3940_v22 }
 0x1a2   : > { %2419 = vmatprep.subr.bf16.mxu0 %v3945_v23  ;;  %2505 = vmatprep.subr.bf16.mxu1 %v3948_v24 }
 0x1a5   : > { %2420 = vmatpush1.bf16.msra.mxu0 %v3943_v25  ;;  %2506 = vmatpush1.bf16.msra.mxu1 %v3946_v26 }
 0x1a6   : > { %2421 = vmatprep.subr.bf16.mxu0 %v3951_v27  ;;  %2507 = vmatprep.subr.bf16.mxu1 %v3954_v28 }
 0x1a9   : > { %2422 = vmatpush1.bf16.msra.mxu0 %v3949_v29  ;;  %2508 = vmatpush1.bf16.msra.mxu1 %v3952_v30  ;;  %v3991_v30 = vld [vmem:[%s4516_s2 + $0x200] ss:$16 sps:$4 sm:$0xff]  }
 0x1aa   : > { %2423 = vmatprep.subr.bf16.mxu0 %v3957_v31  ;;  %2509 = vmatprep.subr.bf16.mxu1 %v3960_v32  ;;  %v3994_v31 = vld [vmem:[%s4516_s2 + $0x208] ss:$16 sps:$4 sm:$0xff]   ;;  %v3999_v32 = vld [vmem:[%s4516_s2 + $0x224] ss:$16 sps:$4 sm:$0xff]  }
 0x1ad   : > { %2424 = vmatpush1.bf16.msra.mxu0 %v3955_v33  ;;  %2510 = vmatpush1.bf16.msra.mxu1 %v3958_v34  ;;  %v4002_v33 = vld [vmem:[%s4516_s2 + $0x22c] ss:$16 sps:$4 sm:$0xff]   ;;  %v3997_v34 = vld [vmem:[%s4516_s2 + $0x220] ss:$16 sps:$4 sm:$0xff]  }
 0x1ae   : > { %2425 = vmatprep.subr.bf16.mxu0 %v3963_v35  ;;  %2511 = vmatprep.subr.bf16.mxu1 %v3966_v36  ;;  %v4000_v35 = vld [vmem:[%s4516_s2 + $0x228] ss:$16 sps:$4 sm:$0xff]   ;;  %v4005_v36 = vld [vmem:[%s4516_s2 + $0x244] ss:$16 sps:$4 sm:$0xff]  }
 0x1b1   : > { %2426 = vmatpush1.bf16.msra.mxu0 %v3961_v37  ;;  %2512 = vmatpush1.bf16.msra.mxu1 %v3964_v38  ;;  %v4008_v37 = vld [vmem:[%s4516_s2 + $0x24c] ss:$16 sps:$4 sm:$0xff]   ;;  %v4003_v38 = vld [vmem:[%s4516_s2 + $0x240] ss:$16 sps:$4 sm:$0xff]  }
 0x1b2   : > { %2427 = vmatprep.subr.bf16.mxu0 %v3969_v39  ;;  %2513 = vmatprep.subr.bf16.mxu1 %v3972_v40  ;;  %v4006_v39 = vld [vmem:[%s4516_s2 + $0x248] ss:$16 sps:$4 sm:$0xff]   ;;  %v4011_v40 = vld [vmem:[%s4516_s2 + $0x264] ss:$16 sps:$4 sm:$0xff]  }
 0x1b5   : > { %2428 = vmatpush1.bf16.msra.mxu0 %v3967_v41  ;;  %2514 = vmatpush1.bf16.msra.mxu1 %v3970_v42  ;;  %v4014_v41 = vld [vmem:[%s4516_s2 + $0x26c] ss:$16 sps:$4 sm:$0xff]   ;;  %v4009_v42 = vld [vmem:[%s4516_s2 + $0x260] ss:$16 sps:$4 sm:$0xff]  }
 0x1b6   : > { %2429 = vmatprep.subr.bf16.mxu0 %v3975_v43  ;;  %2515 = vmatprep.subr.bf16.mxu1 %v3978_v44  ;;  %v4012_v43 = vld [vmem:[%s4516_s2 + $0x268] ss:$16 sps:$4 sm:$0xff]   ;;  %v4017_v44 = vld [vmem:[%s4516_s2 + $0x284] ss:$16 sps:$4 sm:$0xff]  }
 0x1b9   : > { %2430 = vmatpush1.bf16.msra.mxu0 %v3973_v45  ;;  %2516 = vmatpush1.bf16.msra.mxu1 %v3976_v46  ;;  %v4020_v45 = vld [vmem:[%s4516_s2 + $0x28c] ss:$16 sps:$4 sm:$0xff]   ;;  %v4015_v46 = vld [vmem:[%s4516_s2 + $0x280] ss:$16 sps:$4 sm:$0xff]  }
 0x1ba   : > { %2431 = vmatprep.subr.bf16.mxu0 %v3981_v47  ;;  %2517 = vmatprep.subr.bf16.mxu1 %v3984_v48  ;;  %v4018_v47 = vld [vmem:[%s4516_s2 + $0x288] ss:$16 sps:$4 sm:$0xff]   ;;  %v4023_v48 = vld [vmem:[%s4516_s2 + $0x2a4] ss:$16 sps:$4 sm:$0xff]  }
 0x1bd   : > { %2432 = vmatpush1.bf16.msra.mxu0 %v3979_v49  ;;  %2518 = vmatpush1.bf16.msra.mxu1 %v3982_v50  ;;  %v4026_v49 = vld [vmem:[%s4516_s2 + $0x2ac] ss:$16 sps:$4 sm:$0xff]   ;;  %v4021_v50 = vld [vmem:[%s4516_s2 + $0x2a0] ss:$16 sps:$4 sm:$0xff]  }
 0x1be   : > { %2433 = vmatprep.subr.bf16.mxu0 %v3987_v52  ;;  %2519 = vmatprep.subr.bf16.mxu1 %v3990_v53  ;;  %v4024_v52 = vld [vmem:[%s4516_s2 + $0x2a8] ss:$16 sps:$4 sm:$0xff]   ;;  %v4029_v53 = vld [vmem:[%s4516_s2 + $0x2c4] ss:$16 sps:$4 sm:$0xff]  }
 0x1c1   : > { %2434 = vmatpush1.bf16.msra.mxu0 %v3985_v54  ;;  %2520 = vmatpush1.bf16.msra.mxu1 %v3988_v55  ;;  %v4032_v54 = vld [vmem:[%s4516_s2 + $0x2cc] ss:$16 sps:$4 sm:$0xff]   ;;  %v4027_v55 = vld [vmem:[%s4516_s2 + $0x2c0] ss:$16 sps:$4 sm:$0xff]  }
 0x1c2   : > { %2446 = vmatprep.subr.bf16.mxu0 %v3993_v56  ;;  %2532 = vmatprep.subr.bf16.mxu1 %v3996_v57  ;;  %v4030_v56 = vld [vmem:[%s4516_s2 + $0x2c8] ss:$16 sps:$4 sm:$0xff]   ;;  %v4035_v57 = vld [vmem:[%s4516_s2 + $0x2e4] ss:$16 sps:$4 sm:$0xff]  }
 0x257   : > { %v1505_v63 = vpop.f32.mrb[4].mxu0  ;;  %v1591_v51 = vpop.f32.mrb[4].mxu1 }
 0x258   : > { %v3590_v0 = vadd.f32 %v1505_v63, %v771_v59  ;;  %v3594_v1 = vadd.f32 %v1591_v51, %v779_v60  ;;  %v1507_v2 = vpop.f32.mrb[5].mxu0  ;;  %v1593_v3 = vpop.f32.mrb[5].mxu1  ;;  %v4039_v63 = vld [vmem:[%s4516_s2 + $0x300] ss:$16 sps:$4 sm:$0xff]   ;;  %v4042_v51 = vld [vmem:[%s4516_s2 + $0x308] ss:$16 sps:$4 sm:$0xff]  }
 0x259   : > { %v3591_v4 = vadd.f32 %v1507_v2, %v775_v61  ;;  %v3595_v5 = vadd.f32 %v1593_v3, %v783_v62  ;;  %v1509_v6 = vpop.f32.mrb[6].mxu0  ;;  %v1595_v7 = vpop.f32.mrb[6].mxu1  ;;  %v4045_v2 = vld [vmem:[%s4516_s2 + $0x320] ss:$16 sps:$4 sm:$0xff]   ;;  %v4048_v3 = vld [vmem:[%s4516_s2 + $0x328] ss:$16 sps:$4 sm:$0xff]  }
 0x25a   : > { %v3592_v8 = vadd.f32 %v1509_v6, %v771_v59  ;;  %v3596_v9 = vadd.f32 %v1595_v7, %v779_v60  ;;  %v1511_v10 = vpop.f32.mrb[7].mxu0  ;;  %v1597_v11 = vpop.f32.mrb[7].mxu1  ;;  %v1600_v18 = vmax.f32 %v3590_v0, 0.0  ;;  %v1602_v19 = vmax.f32 %v3594_v1, 0.0  ;;  %v4033_v59 = vld [vmem:[%s4516_s2 + $0x2e0] ss:$16 sps:$4 sm:$0xff]  }
 0x25b   : > { %v3593_v13 = vadd.f32 %v1511_v10, %v775_v61  ;;  %v3597_v16 = vadd.f32 %v1597_v11, %v783_v62  ;;  %v1601_v22 = vmax.f32 %v3591_v4, 0.0  ;;  %v1603_v23 = vmax.f32 %v3595_v5, 0.0  ;;  %v4036_v60 = vld [vmem:[%s4516_s2 + $0x2e8] ss:$16 sps:$4 sm:$0xff]   ;;  %v4041_v61 = vld [vmem:[%s4516_s2 + $0x304] ss:$16 sps:$4 sm:$0xff]  }
 0x25c   : > { %v1604_v20 = vmax.f32 %v3592_v8, 0.0  ;;  %v1606_v21 = vmax.f32 %v3596_v9, 0.0  ;;  %v4044_v62 = vld [vmem:[%s4516_s2 + $0x30c] ss:$16 sps:$4 sm:$0xff]   ;;  %v4047_v0 = vld [vmem:[%s4516_s2 + $0x324] ss:$16 sps:$4 sm:$0xff]  }
 0x25d   : > { %v1605_v24 = vmax.f32 %v3593_v13, 0.0  ;;  %v1607_v25 = vmax.f32 %v3597_v16, 0.0  ;;  %v4050_v1 = vld [vmem:[%s4516_s2 + $0x32c] ss:$16 sps:$4 sm:$0xff]   ;;  %v4053_v4 = vld [vmem:[%s4516_s2 + $0x344] ss:$16 sps:$4 sm:$0xff]  }
 0x25e   : > { %v1608_v26 = vpack.c.bf16 %v1604_v20, %v1600_v18  ;;  %v4763_v27 = vpack.c.bf16 %v1606_v21, %v1602_v19  ;;  %v4056_v5 = vld [vmem:[%s4516_s2 + $0x34c] ss:$16 sps:$4 sm:$0xff]   ;;  %v4051_v6 = vld [vmem:[%s4516_s2 + $0x340] ss:$16 sps:$4 sm:$0xff]   ;;  %v4054_v7 = vld [vmem:[%s4516_s2 + $0x348] ss:$16 sps:$4 sm:$0xff]  }
 0x25f   : > { %v1609_v28 = vpack.c.bf16 %v1605_v24, %v1601_v22  ;;  %v1611_v29 = vpack.c.bf16 %v1607_v25, %v1603_v23  ;;  %v4059_v8 = vld [vmem:[%s4516_s2 + $0x364] ss:$16 sps:$4 sm:$0xff]   ;;  %v4062_v9 = vld [vmem:[%s4516_s2 + $0x36c] ss:$16 sps:$4 sm:$0xff]   ;;  %v4057_v10 = vld [vmem:[%s4516_s2 + $0x360] ss:$16 sps:$4 sm:$0xff]  }
 0x260   : > { %v4060_v11 = vld [vmem:[%s4516_s2 + $0x368] ss:$16 sps:$4 sm:$0xff]   ;;  %v4065_v13 = vld [vmem:[%s4516_s2 + $0x384] ss:$16 sps:$4 sm:$0xff]   ;;  %v4068_v16 = vld [vmem:[%s4516_s2 + $0x38c] ss:$16 sps:$4 sm:$0xff]  }
 0x261   : > { %2435 = vmatprep.mubr.bf16.mxu0 %v1609_v28  ;;  %2521 = vmatprep.mubr.bf16.mxu1 %v1609_v28  ;;  %v4063_v18 = vld [vmem:[%s4516_s2 + $0x380] ss:$16 sps:$4 sm:$0xff]   ;;  %v4066_v19 = vld [vmem:[%s4516_s2 + $0x388] ss:$16 sps:$4 sm:$0xff]   ;;  %v4071_v20 = vld [vmem:[%s4516_s2 + $0x3a4] ss:$16 sps:$4 sm:$0xff]  }
 0x262   : > { %2436 = vmatmul.mubr.bf16.vlgmr.msra.gmra.mrb[8].mxu0 %v1608_v26  ;;  %2522 = vmatmul.mubr.bf16.vlgmr.msra.gmra.mrb[8].mxu1 %v1608_v26  ;;  %v4074_v21 = vld [vmem:[%s4516_s2 + $0x3ac] ss:$16 sps:$4 sm:$0xff]   ;;  %v4069_v22 = vld [vmem:[%s4516_s2 + $0x3a0] ss:$16 sps:$4 sm:$0xff]   ;;  %v4072_v23 = vld [vmem:[%s4516_s2 + $0x3a8] ss:$16 sps:$4 sm:$0xff]  }
 0x263   : > { %2447 = vmatpush1.bf16.msra.mxu0 %v3991_v30  ;;  %2533 = vmatpush1.bf16.msra.mxu1 %v3994_v31  ;;  %v4077_v24 = vld [vmem:[%s4516_s2 + $0x3c4] ss:$16 sps:$4 sm:$0xff]   ;;  %v4080_v25 = vld [vmem:[%s4516_s2 + $0x3cc] ss:$16 sps:$4 sm:$0xff]   ;;  %v4075_v26 = vld [vmem:[%s4516_s2 + $0x3c0] ss:$16 sps:$4 sm:$0xff]  }
 0x264   : > { %2478 = vmatprep.mubr.bf16.mxu0 %v1611_v29  ;;  %2564 = vmatprep.mubr.bf16.mxu1 %v1611_v29  ;;  %v4078_v28 = vld [vmem:[%s4516_s2 + $0x3c8] ss:$16 sps:$4 sm:$0xff]   ;;  %v4083_v29 = vld [vmem:[%s4516_s2 + $0x3e4] ss:$16 sps:$4 sm:$0xff]   ;;  %v4086_v30 = vld [vmem:[%s4516_s2 + $0x3ec] ss:$16 sps:$4 sm:$0xff]  }
 0x265   : > { %2448 = vmatprep.subr.bf16.mxu0 %v3999_v32  ;;  %2534 = vmatprep.subr.bf16.mxu1 %v4002_v33  ;;  %v4081_v31 = vld [vmem:[%s4516_s2 + $0x3e0] ss:$16 sps:$4 sm:$0xff]   ;;  %v4084_v32 = vld [vmem:[%s4516_s2 + $0x3e8] ss:$16 sps:$4 sm:$0xff]   ;;  %s3033_s2 = scalar_lea.sflag [#allocation4], %s4505_s15 }
 0x266   : > { %v4087_v33 = vld [vmem:[%s4605_s25 + $0x40] sm:$0xff]  }
 0x267   : > { %2449 = vmatpush1.bf16.msra.mxu0 %v3997_v34  ;;  %2535 = vmatpush1.bf16.msra.mxu1 %v4000_v35  ;;  %v4088_v34 = vld [vmem:[%s4605_s25 + $0xc0] sm:$0xff]  }
 0x268   : > { %2450 = vmatprep.subr.bf16.mxu0 %v4005_v36  ;;  %2536 = vmatprep.subr.bf16.mxu1 %v4008_v37  ;;  %v4089_v35 = vld [vmem:[%s4605_s25] sm:$0xff]   ;;  %v4091_v37 = vld [vmem:[%s4605_s25 + $0x48] sm:$0xff]  }
 0x269   : > { %v4090_v36 = vld [vmem:[%s4605_s25 + $0x80] sm:$0xff]  }
 0x26b   : > { %2451 = vmatpush1.bf16.msra.mxu0 %v4003_v38  ;;  %2537 = vmatpush1.bf16.msra.mxu1 %v4006_v39  ;;  %v4092_v38 = vld [vmem:[%s4605_s25 + $0xc8] sm:$0xff]  }
 0x26c   : > { %2452 = vmatprep.subr.bf16.mxu0 %v4011_v40  ;;  %2538 = vmatprep.subr.bf16.mxu1 %v4014_v41  ;;  %v4093_v39 = vld [vmem:[%s4605_s25 + $0x8] sm:$0xff]   ;;  %v4095_v41 = vld [vmem:[%s4605_s25 + $0x50] sm:$0xff]  }
 0x26d   : > { %v4094_v40 = vld [vmem:[%s4605_s25 + $0x88] sm:$0xff]  }
 0x26f   : > { %2453 = vmatpush1.bf16.msra.mxu0 %v4009_v42  ;;  %2539 = vmatpush1.bf16.msra.mxu1 %v4012_v43  ;;  %v4096_v42 = vld [vmem:[%s4605_s25 + $0xd0] sm:$0xff]  }
 0x270   : > { %2454 = vmatprep.subr.bf16.mxu0 %v4017_v44  ;;  %2540 = vmatprep.subr.bf16.mxu1 %v4020_v45  ;;  %v4097_v43 = vld [vmem:[%s4605_s25 + $0x10] sm:$0xff]   ;;  %v4100_v45 = vld [vmem:[%s4605_s25 + $0xd8] sm:$0xff]  }
 0x271   : > { %v4098_v44 = vld [vmem:[%s4605_s25 + $0x90] sm:$0xff]  }
 0x273   : > { %2455 = vmatpush1.bf16.msra.mxu0 %v4015_v46  ;;  %2541 = vmatpush1.bf16.msra.mxu1 %v4018_v47  ;;  %v4101_v46 = vld [vmem:[%s4605_s25 + $0x18] sm:$0xff]  }
 0x274   : > { %2456 = vmatprep.subr.bf16.mxu0 %v4023_v48  ;;  %2542 = vmatprep.subr.bf16.mxu1 %v4026_v49  ;;  %v4102_v47 = vld [vmem:[%s4605_s25 + $0x98] sm:$0xff]   ;;  %v4103_v48 = vld [vmem:[%s4605_s25 + $0x60] sm:$0xff]  }
 0x275   : > { %v4104_v49 = vld [vmem:[%s4605_s25 + $0xe0] sm:$0xff]  }
 0x277   : > { %2457 = vmatpush1.bf16.msra.mxu0 %v4021_v50  ;;  %2543 = vmatpush1.bf16.msra.mxu1 %v4024_v52  ;;  %v4105_v50 = vld [vmem:[%s4605_s25 + $0x20] sm:$0xff]  }
 0x278   : > { %2458 = vmatprep.subr.bf16.mxu0 %v4029_v53  ;;  %2544 = vmatprep.subr.bf16.mxu1 %v4032_v54  ;;  %v4106_v52 = vld [vmem:[%s4605_s25 + $0xa0] sm:$0xff]   ;;  %v4107_v53 = vld [vmem:[%s4605_s25 + $0x68] sm:$0xff]  }
 0x279   : > { %v4108_v54 = vld [vmem:[%s4605_s25 + $0xe8] sm:$0xff]  }
 0x27b   : > { %2459 = vmatpush1.bf16.msra.mxu0 %v4027_v55  ;;  %2545 = vmatpush1.bf16.msra.mxu1 %v4030_v56  ;;  %v4109_v55 = vld [vmem:[%s4605_s25 + $0x28] sm:$0xff]  }
 0x27c   : > { %2460 = vmatprep.subr.bf16.mxu0 %v4035_v57  ;;  %2546 = vmatprep.subr.bf16.mxu1 %v4038_v58  ;;  %v4110_v56 = vld [vmem:[%s4605_s25 + $0xa8] sm:$0xff]   ;;  %v4111_v57 = vld [vmem:[%s4605_s25 + $0x70] sm:$0xff]  }
 0x27d   : > { %v4112_v58 = vld [vmem:[%s4605_s25 + $0xf0] sm:$0xff]  }
 0x27f   : > { %2461 = vmatpush1.bf16.msra.mxu0 %v4033_v59  ;;  %2547 = vmatpush1.bf16.msra.mxu1 %v4036_v60  ;;  %v4113_v59 = vld [vmem:[%s4605_s25 + $0x30] sm:$0xff]  }
 0x280   : > { %2462 = vmatprep.subr.bf16.mxu0 %v4041_v61  ;;  %2548 = vmatprep.subr.bf16.mxu1 %v4044_v62  ;;  %v4114_v60 = vld [vmem:[%s4605_s25 + $0xb0] sm:$0xff]   ;;  %v4115_v61 = vld [vmem:[%s4605_s25 + $0x78] sm:$0xff]  }
 0x281   : > { %v4116_v62 = vld [vmem:[%s4605_s25 + $0xf8] sm:$0xff]  }
 0x283   : > { %2463 = vmatpush1.bf16.msra.mxu0 %v4039_v63  ;;  %2549 = vmatpush1.bf16.msra.mxu1 %v4042_v51  ;;  %v4117_v63 = vld [vmem:[%s4605_s25 + $0x38] sm:$0xff]  }
 0x284   : > { %2464 = vmatprep.subr.bf16.mxu0 %v4047_v0  ;;  %2550 = vmatprep.subr.bf16.mxu1 %v4050_v1  ;;  %v4118_v51 = vld [vmem:[%s4605_s25 + $0xb8] sm:$0xff]   ;;  %v3372_v0 = vld [vmem:[%s4611_s22 + $0x8] sm:$0xf] }
 0x285   : > { %v1746_v1 = vrot.slane %v3372_v0, %v4613_v12 }
 0x287   : > { %2465 = vmatpush1.bf16.msra.mxu0 %v4045_v2  ;;  %2551 = vmatpush1.bf16.msra.mxu1 %v4048_v3  ;;  %v1754_v2 = vrot.slane %v3372_v0, %v4618_v15  ;;  %v1750_v3 = vrot.slane %v3372_v0, %v4616_v14 }
 0x288   : > { %2466 = vmatprep.subr.bf16.mxu0 %v4053_v4  ;;  %2552 = vmatprep.subr.bf16.mxu1 %v4056_v5  ;;  %v1758_v4 = vrot.slane %v3372_v0, %v4621_v17 }
 0x28b   : > { %2467 = vmatpush1.bf16.msra.mxu0 %v4051_v6  ;;  %2553 = vmatpush1.bf16.msra.mxu1 %v4054_v7 }
 0x28c   : > { %2468 = vmatprep.subr.bf16.mxu0 %v4059_v8  ;;  %2554 = vmatprep.subr.bf16.mxu1 %v4062_v9 }
 0x28f   : > { %2469 = vmatpush1.bf16.msra.mxu0 %v4057_v10  ;;  %2555 = vmatpush1.bf16.msra.mxu1 %v4060_v11 }
 0x290   : > { %2470 = vmatprep.subr.bf16.mxu0 %v4065_v13  ;;  %2556 = vmatprep.subr.bf16.mxu1 %v4068_v16 }
 0x293   : > { %2471 = vmatpush1.bf16.msra.mxu0 %v4063_v18  ;;  %2557 = vmatpush1.bf16.msra.mxu1 %v4066_v19 }
 0x294   : > { %2472 = vmatprep.subr.bf16.mxu0 %v4071_v20  ;;  %2558 = vmatprep.subr.bf16.mxu1 %v4074_v21 }
 0x297   : > { %2473 = vmatpush1.bf16.msra.mxu0 %v4069_v22  ;;  %2559 = vmatpush1.bf16.msra.mxu1 %v4072_v23 }
 0x298   : > { %2474 = vmatprep.subr.bf16.mxu0 %v4077_v24  ;;  %2560 = vmatprep.subr.bf16.mxu1 %v4080_v25 }
 0x29b   : > { %2475 = vmatpush1.bf16.msra.mxu0 %v4075_v26  ;;  %2561 = vmatpush1.bf16.msra.mxu1 %v4078_v28 }
 0x29c   : > { %2476 = vmatprep.subr.bf16.mxu0 %v4083_v29  ;;  %2562 = vmatprep.subr.bf16.mxu1 %v4086_v30 }
 0x29f   : > { %2477 = vmatpush1.bf16.msra.mxu0 %v4081_v31  ;;  %2563 = vmatpush1.bf16.msra.mxu1 %v4084_v32 }
 0x2a0   : > { %3546 = vmatprep.subr.bf16.mxu0 %v4087_v33  ;;  %3568 = vmatprep.subr.bf16.mxu1 %v4088_v34 }
 0x2a2   : > { %2479 = vmatmul.mubr.bf16.vlgmr.msra.gmra.mrb[8].mxu0 %v4763_v27  ;;  %2565 = vmatmul.mubr.bf16.vlgmr.msra.gmra.mrb[8].mxu1 %v4763_v27  ;;  %v4099_v27 = vld [vmem:[%s4605_s25 + $0x58] sm:$0xff]   ;;  %s447_s25 = scalar_lea.vmem [#allocation7], %s3229_s12 }
 0x2a3   : > { %3547 = vmatpush3.bf16.msra.mxu0 %v4089_v35  ;;  %3569 = vmatpush3.bf16.msra.mxu1 %v4090_v36  ;;  %v3501_v36 = vld [vmem:[%s470_s26] ss:$0 sm:$0xff]  ;;  %s3048_s11 = sshll.u32 %s447_s25, 4  ;;  %s4887_s11 = int_to_ptr.vmem [resolvable:$true] %s3048_s11 }
 0x2a4   : > { %3548 = vmatprep.subr.bf16.mxu0 %v4091_v37  ;;  %3570 = vmatprep.subr.bf16.mxu1 %v4092_v38  ;;  %s4195_s26 = scalar_lea.vmem %s4887_s11, 256 }
 0x2a5   : > { %p4196_p3 = scmp.ne.s32.totalorder %s4887_s11, %s4195_s26 }
 0x2a7   : > { %3549 = vmatpush3.bf16.msra.mxu0 %v4093_v39  ;;  %3571 = vmatpush3.bf16.msra.mxu1 %v4094_v40  ;;  %p4197_p13 = pnand %p4196_p3, %p4976_p12 }
 0x2a8   : > { %3550 = vmatprep.subr.bf16.mxu0 %v4095_v41  ;;  %3572 = vmatprep.subr.bf16.mxu1 %v4096_v42 }
 0x2a9   : > { %p4198_p7 = pneg %p4197_p13 }
 0x2ab   : > { %3551 = vmatpush3.bf16.msra.mxu0 %v4097_v43  ;;  %3573 = vmatpush3.bf16.msra.mxu1 %v4098_v44 }
 0x2ac   : > { %3552 = vmatprep.subr.bf16.mxu0 %v4099_v27  ;;  %3574 = vmatprep.subr.bf16.mxu1 %v4100_v45 }
 0x2af   : > { %3553 = vmatpush3.bf16.msra.mxu0 %v4101_v46  ;;  %3575 = vmatpush3.bf16.msra.mxu1 %v4102_v47 }
 0x2b0   : > { %3554 = vmatprep.subr.bf16.mxu0 %v4103_v48  ;;  %3576 = vmatprep.subr.bf16.mxu1 %v4104_v49 }
 0x2b3   : > { %3555 = vmatpush3.bf16.msra.mxu0 %v4105_v50  ;;  %3577 = vmatpush3.bf16.msra.mxu1 %v4106_v52  ;;  %v3534_v50 = vld [vmem:[%s4950_s7] ss:$0 sm:$0xff] }
 0x2b4   : > { %3556 = vmatprep.subr.bf16.mxu0 %v4107_v53  ;;  %3578 = vmatprep.subr.bf16.mxu1 %v4108_v54 }
 0x2b7   : > { %3557 = vmatpush3.bf16.msra.mxu0 %v4109_v55  ;;  %3579 = vmatpush3.bf16.msra.mxu1 %v4110_v56 }
 0x2b8   : > { %3558 = vmatprep.subr.bf16.mxu0 %v4111_v57  ;;  %3580 = vmatprep.subr.bf16.mxu1 %v4112_v58 }
 0x2bb   : > { %3559 = vmatpush3.bf16.msra.mxu0 %v4113_v59  ;;  %3581 = vmatpush3.bf16.msra.mxu1 %v4114_v60 }
 0x2bc   : > { %3560 = vmatprep.subr.bf16.mxu0 %v4115_v61  ;;  %3582 = vmatprep.subr.bf16.mxu1 %v4116_v62 }
 0x2bf   : > { %3561 = vmatpush3.bf16.msra.mxu0 %v4117_v63  ;;  %3583 = vmatpush3.bf16.msra.mxu1 %v4118_v51 }
 0x375   : > { %v2480_v5 = vpop.f32.mrb[8].mxu0  ;;  %v2566_v6 = vpop.f32.mrb[8].mxu1 }
 0x376   : > { %v3598_v7 = vadd.f32 %v2480_v5, %v1746_v1  ;;  %v3602_v8 = vadd.f32 %v2566_v6, %v1754_v2  ;;  %v2482_v9 = vpop.f32.mrb[9].mxu0  ;;  %v2568_v10 = vpop.f32.mrb[9].mxu1 }
 0x377   : > { %v3599_v11 = vadd.f32 %v2482_v9, %v1750_v3  ;;  %v3603_v13 = vadd.f32 %v2568_v10, %v1758_v4  ;;  %v2484_v16 = vpop.f32.mrb[10].mxu0  ;;  %v2570_v18 = vpop.f32.mrb[10].mxu1 }
 0x378   : > { %v3600_v19 = vadd.f32 %v2484_v16, %v1746_v1  ;;  %v3604_v20 = vadd.f32 %v2570_v18, %v1754_v2  ;;  %v2486_v21 = vpop.f32.mrb[11].mxu0  ;;  %v2572_v12 = vpop.f32.mrb[11].mxu1  ;;  %v2575_v23 = vmax.f32 %v3598_v7, 0.0  ;;  %v2577_v14 = vmax.f32 %v3602_v8, 0.0 }
 0x379   : > { %v3601_v22 = vadd.f32 %v2486_v21, %v1750_v3  ;;  %v3605_v15 = vadd.f32 %v2572_v12, %v1758_v4  ;;  %v2576_v25 = vmax.f32 %v3599_v11, 0.0  ;;  %v2578_v26 = vmax.f32 %v3603_v13, 0.0 }
 0x37a   : > { %v2579_v17 = vmax.f32 %v3600_v19, 0.0  ;;  %v2581_v24 = vmax.f32 %v3604_v20, 0.0  ;;  %v3535_v20 = vld [vmem:[%s4950_s7 + $0x1] ss:$0 sm:$0xff] }
 0x37b   : > { %v2580_v28 = vmax.f32 %v3601_v22, 0.0  ;;  %v2582_v29 = vmax.f32 %v3605_v15, 0.0 }
 0x37c   : > { %v2583_v30 = vpack.c.bf16 %v2579_v17, %v2575_v23  ;;  %v2585_v31 = vpack.c.bf16 %v2581_v24, %v2577_v14 }
 0x37d   : > { %v2584_v32 = vpack.c.bf16 %v2580_v28, %v2576_v25  ;;  %v2586_v33 = vpack.c.bf16 %v2582_v29, %v2578_v26 }
 0x37f   : > { %2882 = vmatprep.mubr.bf16.mxu0 %v2584_v32  ;;  %2923 = vmatprep.mubr.bf16.mxu1 %v2586_v33 }
 0x380   : > { %2883 = vmatmul.mubr.bf16.vlgmr.msra.gmra.mrb[12].mxu0 %v2583_v30  ;;  %2924 = vmatmul.mubr.bf16.vlgmr.msra.gmra.mrb[12].mxu1 %v2585_v31 }
 0x453   : > { %v3562_v34 = vpop.f32.mrb[12].mxu0  ;;  %v3584_v35 = vpop.f32.mrb[12].mxu1 }
 0x454   : > { %v3563_v37 = vpop.f32.mrb[13].mxu0  ;;  %v3585_v38 = vpop.f32.mrb[13].mxu1 }
 0x455   : > { %v3564_v39 = vadd.f32 %v3563_v37, %v3562_v34  ;;  %v3586_v40 = vadd.f32 %v3585_v38, %v3584_v35  ;;  %v3565_v41 = vpop.f32.mrb[14].mxu0  ;;  %v3587_v42 = vpop.f32.mrb[14].mxu1 }
 0x456   : > { %v3566_v43 = vpop.f32.mrb[15].mxu0  ;;  %v3588_v44 = vpop.f32.mrb[15].mxu1 }
 0x457   : > { %v2885_v27 = vadd.f32 %v3564_v39, %v3501_v36  ;;  %v3567_v45 = vadd.f32 %v3566_v43, %v3565_v41  ;;  %v3589_v46 = vadd.f32 %v3588_v44, %v3587_v42 }
 0x459   : > { %v2888_v47 = vadd.f32 %v3567_v45, %v3501_v36  ;;  %v4870_v48 = vadd.f32 %v3586_v40, %v2885_v27 }
 0x45b   : > { %v4872_v49 = vadd.f32 %v3589_v46, %v2888_v47  ;;  %2940 = vrot.lane.b32.xlu0 %v4870_v48, %s4288_s21 }
 0x45f   : > { %2942 = vrot.lane.b32.xlu0 %v4872_v49, %s4288_s21  ;;  %s4199_s21 = sshll.u32 %s4290_s30, 4  ;;  %s4200_s21 = int_to_ptr.vmem [resolvable:$false] %s4199_s21 }
 0x460   : > { %s4201_s13 = scalar_lea.vmem %s4200_s21, 512  ;;  %p4202_p10 = scmp.lt.s32.totalorder %s4887_s11, %s4200_s21 }
 0x461   : > { %p4203_p9 = scmp.lt.s32.totalorder %s4201_s13, %s4195_s26 }
 0x463   : > { %p4204_p11 = por %p4203_p9, %p4202_p10 }
 0x465   : > { %p4205_p1 = pnand %p4204_p11, %p4198_p7 }
 0x4cd   : > { %v2941_v52 = vpop.permute.xlu0 %2940 }
 0x4ce   : > { %v2946_v53 = vsub.f32 %v3534_v50, %v2941_v52 }
 0x4d0   : > { %v2950_v54 = vand.u32 2147483647, %v2946_v53  ;;  %v2948_v9 = vmax.f32 %v2946_v53, 0.0 }
 0x4d1   : > { %v2943_v55 = vpop.permute.xlu0 %2942 }
 0x4d2   : > { %v2952_v56 = vsub.f32 0.0, %v2950_v54  ;;  %v2947_v57 = vsub.f32 %v3534_v50, %v2943_v55 }
 0x4d4   : > { %v2954_v58 = vmul.f32 1.442695, %v2952_v56  ;;  %v2951_v59 = vand.u32 2147483647, %v2947_v57  ;;  %v2949_v12 = vmax.f32 %v2947_v57, 0.0 }
 0x4d6   : > { %4119 = vpow2.f32 %v2954_v58  ;;  %v2953_v60 = vsub.f32 0.0, %v2951_v59 }
 0x4d8   : > { %v2956_v61 = vmul.f32 1.442695, %v2953_v60 }
 0x4da   : > { %4121 = vpow2.f32 %v2956_v61 }
 0x4e0   : > { %v4120_v62 = vpop.eup %4119 }
 0x4e1   : > { %v2958_v63 = vadd.f32 1.0, %v4120_v62  ;;  %v2961_v1 = vmul.f32 -0.5, %v4120_v62  ;;  %v2964_v4 = vand.u32 2147483647, %v4120_v62 }
 0x4e3   : > { %4123 = vlog2.f32 %v2958_v63  ;;  %v2962_v2 = vadd.f32 1.0, %v2961_v1  ;;  %vm2965_vm2 = vcmp.lt.f32.partialorder %v2964_v4, 0.0004427343 }
 0x4e4   : > { %v4122_v51 = vpop.eup %4121 }
 0x4e5   : > { %v2967_v0 = vadd.f32 1.0, %v4122_v51  ;;  %v2970_v3 = vmul.f32 -0.5, %v4122_v51  ;;  %v2963_v7 = vmul.f32 %v4120_v62, %v2962_v2  ;;  %v2973_v10 = vand.u32 2147483647, %v4122_v51 }
 0x4e7   : > { %4125 = vlog2.f32 %v2967_v0  ;;  %v2971_v8 = vadd.f32 1.0, %v2970_v3  ;;  %vm2974_vm3 = vcmp.lt.f32.partialorder %v2973_v10, 0.0004427343 }
 0x4e9   : > { %v2972_v19 = vmul.f32 %v4122_v51, %v2971_v8 }
 0x4ed   : > { %v4124_v5 = vpop.eup %4123 }
 0x4ee   : > { %v2960_v6 = vmul.f32 0.6931472, %v4124_v5 }
 0x4f0   : > { %v2966_v11 = vsel %vm2965_vm2, %v2963_v7, %v2960_v6 }
 0x4f1   : > { %v4126_v13 = vpop.eup %4125  ;;  %v2976_v16 = vadd.f32 %v2966_v11, %v2948_v9 }
 0x4f2   : > { %v2969_v18 = vmul.f32 0.6931472, %v4126_v13 }
 0x4f3   : > { %v2978_v21 = vsub.f32 %v3534_v50, %v2976_v16 }
 0x4f4   : > { %v2975_v22 = vsel %vm2974_vm3, %v2972_v19, %v2969_v18 }
 0x4f5   : > { %v2977_v15 = vadd.f32 %v2975_v22, %v2949_v12  ;;  %v2984_v23 = vsub.f32 %v2978_v21, %v3535_v20 }
 0x4f7   : > { %v2979_v14 = vsub.f32 %v3534_v50, %v2977_v15  ;;  %v2988_v17 = vand.u32 2147483647, %v2984_v23  ;;  %v2986_v43 = vmax.f32 %v2984_v23, 0.0 }
 0x4f9   : > { %v2990_v24 = vsub.f32 0.0, %v2988_v17  ;;  %v2985_v25 = vsub.f32 %v2979_v14, %v3535_v20 }
 0x4fb   : > { %v2992_v26 = vmul.f32 1.442695, %v2990_v24  ;;  %v2989_v28 = vand.u32 2147483647, %v2985_v25  ;;  %v2987_v53 = vmax.f32 %v2985_v25, 0.0 }
 0x4fd   : > { %4127 = vpow2.f32 %v2992_v26  ;;  %v2991_v29 = vsub.f32 0.0, %v2989_v28 }
 0x4ff   : > { %v2994_v30 = vmul.f32 1.442695, %v2991_v29 }
 0x501   : > { %4129 = vpow2.f32 %v2994_v30 }
 0x507   : > { %v4128_v31 = vpop.eup %4127 }
 0x508   : > { %v2996_v32 = vadd.f32 1.0, %v4128_v31  ;;  %v2999_v35 = vmul.f32 -0.5, %v4128_v31  ;;  %v3002_v38 = vand.u32 2147483647, %v4128_v31 }
 0x50a   : > { %4131 = vlog2.f32 %v2996_v32  ;;  %v3000_v36 = vadd.f32 1.0, %v2999_v35  ;;  %vm3003_vm4 = vcmp.lt.f32.partialorder %v3002_v38, 0.0004427343 }
 0x50b   : > { %v4130_v33 = vpop.eup %4129 }
 0x50c   : > { %v3005_v34 = vadd.f32 1.0, %v4130_v33  ;;  %v3008_v37 = vmul.f32 -0.5, %v4130_v33  ;;  %v3001_v41 = vmul.f32 %v4128_v31, %v3000_v36  ;;  %v3011_v44 = vand.u32 2147483647, %v4130_v33 }
 0x50e   : > { %4133 = vlog2.f32 %v3005_v34  ;;  %v3009_v42 = vadd.f32 1.0, %v3008_v37  ;;  %vm3012_vm5 = vcmp.lt.f32.partialorder %v3011_v44, 0.0004427343 }
 0x510   : > { %v3010_v50 = vmul.f32 %v4130_v33, %v3009_v42 }
 0x514   : > { %v4132_v39 = vpop.eup %4131 }
 0x515   : > { %v2998_v40 = vmul.f32 0.6931472, %v4132_v39 }
 0x517   : > { %v3004_v27 = vsel %vm3003_vm4, %v3001_v41, %v2998_v40 }
 0x518   : > { %v4134_v45 = vpop.eup %4133  ;;  %v3014_v46 = vadd.f32 %v3004_v27, %v2986_v43 }
 0x519   : > { %v3007_v47 = vmul.f32 0.6931472, %v4134_v45 }
 0x51a   : > { %v3016_v52 = vadd.f32 %v3535_v20, %v3014_v46 }
 0x51b   : > { %v3013_v54 = vsel %vm3012_vm5, %v3010_v50, %v3007_v47 }
 0x51c   : > { %3020 = vrot.lane.b32.xlu1 %v3016_v52, %s4289_s23  ;;  %v3015_v55 = vadd.f32 %v3013_v54, %v2987_v53 }
 0x51e   : > { %v3017_v56 = vadd.f32 %v3535_v20, %v3015_v55 }
 0x520   : > { %3022 = vrot.lane.b32.xlu1 %v3017_v56, %s4289_s23 }
 0x58e   : > { %v3021_v57 = vpop.permute.xlu1 %3020 }
 0x58f   : > { %v3027_v58 = vsel %vm3026_vm6, %v4870_v48, %v3021_v57 }
 0x590   : > { %3030 = vst.msk [vmem:[%s447_s25] sm:$0xff] %vm3029_vm7, %v3027_v58 }
 0x592   : > { %v3023_v59 = vpop.permute.xlu1 %3022 }
 0x593   : > { %v3028_v60 = vsel %vm3026_vm6, %v4872_v49, %v3023_v59 }
 0x594   : > { %3031 = vst.msk [vmem:[%s447_s25 + $0x8] sm:$0xff] %vm3029_vm7, %v3028_v60 }
 0x595   : > { %4208 = shalt.err (!%p4205_p1)
}
 0x596   : > { %s4209_s17 = scalar_lea.hbm %s4892_s14, 256  ;;  %s4213_s12 = scalar_lea.hbm %s4951_s8, 512 }
 0x597   : > { %p4210_p6 = scmp.ne.s32.totalorder %s4892_s14, %s4209_s17  ;;  %p4214_p4 = scmp.lt.u32.totalorder %s4892_s14, %s4951_s8 }
 0x598   : > { %p4215_p8 = scmp.lt.u32.totalorder %s4213_s12, %s4209_s17  ;;  %p4217_p3 = scmp.lt.u32.totalorder %s4209_s17, %s4892_s14 }
 0x599   : > { %p4211_p2 = pnand %p4210_p6, %p4976_p12 }
 0x59a   : > { %p4216_p0 = por %p4215_p8, %p4214_p4 }
 0x59b   : > { %p4212_p5 = pneg %p4211_p2 }
 0x59c   : > { %p4218_p13 = por %p4217_p3, %p4216_p0 }
 0x59e   : > { %p4219_p7 = pnand %p4218_p13, %p4212_p5 }
 0x5a0   : > { %4222 = shalt.err (!%p4219_p7)
}
 0x5a1   : > { %s4291_s24 = smov 128  }
 0x5a2   : > { %3627 = dma.vmem_to_hbm [thread:$0]  (%p4976_p12), %s4887_s11, 256, %s4892_s14, %s3033_s2, %s4291_s24, %s4291_s24, %s4289_s23  }
 0x5a3 PF: > { %s3063_s22 = sand.u32 1, %s4261_s27   ;;  %p4977_p10 = scmp.ne.s32.totalorder %s4966_s20, 0 }
 0x5a4   : > { %p4978_p9 = scmp.ge.s32.totalorder %s4281_s10, 2  ;;  %s3064_s26 = scalar_lea.sflag [#allocation4], %s3063_s22 }
 0x5a6   : > { %p3637_p11 = pnand %p4978_p9, %p4977_p10 }
 0x5a8   : > { %4256 = dma.done.wait (!%p3637_p11), %s3064_s26, 256  }
 0x5a9   : > { %4258 = vsyncadd (!%p3637_p11), %s3064_s26, 4294967040  ;;  %s27_s10 = sadd.s32 1, %s4281_s10   ;;  %s4979_s18 = sld [smem:[#allocation11_spill]] }
 0x5aa   : > { %p24_p1 = scmp.ge.s32.totalorder %s27_s10, 4   ;;  %s4980_s29 = sld [smem:[#allocation13_spill]] }
 0x5ab   : > { %s4981_s15 = sld [smem:[#allocation12_spill]]  ;;  %s4982_s27 = smov %s4265_s28 }
 0x5ac   : > { %s4984_s30 = smov %s4277_s9  ;;  %26 = sbr.rel (!%p24_p1) target bundleno = 10 (0xa), region = 127 }
 0x5af   : > { %s4983_s28 = smov %s4979_s18 }
 0x5b1   : > { %s4985_s9 = smov %s4981_s15 }
 0x5b3   :  { %3069 = vsyncpa [#allocation3], 1 }
 0x5b4   :  { %3071 = vsyncpa [#allocation3 + $0x1], 1 }
 0x5b5   :  { %3072 = vsyncpa [#allocation6], 1 }
 0x5b6   :  { %3074 = vsyncpa [#allocation6 + $0x1], 1 }
 0x5b7   :  { %3075 = vsyncpa [#allocation4], 1 }
 0x5b8   :  { %3077 = vsyncpa [#allocation4 + $0x1], 1 }

</bundles_post_ra>
